<compile_context>
chip_gen: v7x
topology: tpu7x:2x2x1
jax: 0.10.0
libtpu: 0.0.40
codegen_flags: <defaults>
</compile_context>

<pallas_src>
import jax
import jax.numpy as jnp
from jax import lax
from jax.experimental import pallas as pl
from jax.experimental.pallas import tpu as pltpu


NC_PAD = 128  # lane-dense padded width of the logits block


# ---------------------------------------------------------------------------
# Fused Pallas kernel: LSTM recurrence + MLP head
# ---------------------------------------------------------------------------
def _fused_lstm_mlp_kernel(x_ref, wih_ref, whh_ref, b_ref,
                           b1_ref, b2_ref, b3_ref,
                           w1_hbm, w2_hbm, w3_hbm,
                           out_ref,
                           w1_buf, w2_buf, w3_buf, dma_sem):
    """Fused single-layer unidirectional LSTM + MLP classifier head.

    x_ref:   (T, B)       time-major input (input_size == 1, squeezed)
    wih_ref: (1, 4H)      input->gates weights (row, since I == 1)
    whh_ref: (H, 4H)      hidden->gates weights (transposed PyTorch weight_hh)
    b_ref:   (1, 4H)      bias_ih + bias_hh
    b1/b2/b3_ref:         MLP biases (BN folded into b2/b3), f32
    w1/w2/w3_hbm:         bf16 MLP weights left in HBM (memory_space=pl.ANY)
    out_ref: (B, 128)     padded f32 logits (first num_classes columns real)
    w*_buf:  VMEM scratch for the manually-DMA'd bf16 weights
    dma_sem: (3,) DMA semaphores
    Gate order is PyTorch's: (i, f, g, o).
    """
    T, B = x_ref.shape
    H = whh_ref.shape[0]
    H4 = whh_ref.shape[1]

    # Kick off the head-weight DMAs immediately so the ~0.7 MiB HBM read
    # overlaps the serial LSTM recurrence.
    cp1 = pltpu.make_async_copy(w1_hbm, w1_buf, dma_sem.at[0])
    cp2 = pltpu.make_async_copy(w2_hbm, w2_buf, dma_sem.at[1])
    cp3 = pltpu.make_async_copy(w3_hbm, w3_buf, dma_sem.at[2])
    cp1.start()
    cp2.start()
    cp3.start()

    x = x_ref[...]        # (T, B)
    wih = wih_ref[...]    # (1, 4H)
    whh = whh_ref[...]    # (H, 4H)
    bias = b_ref[...]     # (1, 4H)

    # Input projection hoisted fully out of the loop: I == 1 so it is a bulk
    # VPU broadcast-multiply, no MXU.  Per-step cost becomes a leading-axis
    # slice of gx_all.
    gx_all = x[:, :, None] * wih.reshape(1, 1, H4) + bias.reshape(1, 1, H4)

    # Per-lane constants for the single-tanh gate activation:
    #   sigmoid(x) = 0.5 * (1 + tanh(x / 2))
    # g-gate lanes [2H,3H) use tanh directly (scale 1, offset 0); i/f/o lanes
    # use scale 0.5 before and after the tanh plus offset 0.5.
    lane = lax.broadcasted_iota(jnp.int32, (B, H4), 1)
    g_mask = (lane >= 2 * H) & (lane < 3 * H)
    sc = jnp.where(g_mask, 1.0, 0.5).astype(jnp.float32)
    off = jnp.where(g_mask, 0.0, 0.5).astype(jnp.float32)

    h = jnp.zeros((B, H), jnp.float32)
    c = jnp.zeros((B, H), jnp.float32)

    # Fully-unrolled recurrence (T is static and small here).
    # TODO(synk): for large T switch to lax.fori_loop(..., unroll=4) with
    # (h, c) as carries to bound vreg live ranges.
    for t in range(T):
        gates = gx_all[t] + jnp.dot(h, whh, preferred_element_type=jnp.float32)
        a = jnp.tanh(gates * sc)           # one full-vreg EUP dispatch
        act = a * sc + off                 # (i,f,o)->sigmoid, g->tanh
        i_g = act[:, 0 * H:1 * H]
        f_g = act[:, 1 * H:2 * H]
        g_g = act[:, 2 * H:3 * H]
        o_g = act[:, 3 * H:4 * H]
        c = f_g * c + i_g * g_g
        h = o_g * jnp.tanh(c)

    # MLP head (eval mode): BN1/BN2 already folded into w2/b2 and w3/b3,
    # dropout is identity.  Weights are bf16; matmul inputs cast to bf16,
    # accumulation in f32.
    cp1.wait()
    y = jnp.dot(h.astype(jnp.bfloat16), w1_buf[...],
                preferred_element_type=jnp.float32) + b1_ref[...]
    y = jnp.maximum(y, 0.0)
    cp2.wait()
    y = jnp.dot(y.astype(jnp.bfloat16), w2_buf[...],
                preferred_element_type=jnp.float32) + b2_ref[...]
    y = jnp.maximum(y, 0.0)
    cp3.wait()
    out_ref[...] = (jnp.dot(y.astype(jnp.bfloat16), w3_buf[...],
                            preferred_element_type=jnp.float32) + b3_ref[...])


# ---------------------------------------------------------------------------
# Parameter preparation (one-time): BN fold, bias pre-sum, bf16 cast, padding
# ---------------------------------------------------------------------------
def fold_params(params, eps=1e-5):
    H = params["w_hh_t"].shape[0]
    HID = params["w1_t"].shape[1]
    NC = params["w3_t"].shape[1]

    s1 = params["bn1_gamma"] / jnp.sqrt(params["bn1_var"] + eps)
    t1 = params["bn1_beta"] - params["bn1_mean"] * s1
    s2 = params["bn2_gamma"] / jnp.sqrt(params["bn2_var"] + eps)
    t2 = params["bn2_beta"] - params["bn2_mean"] * s2

    # (z*s + t) @ W + b  ==  z @ (s[:,None]*W) + (t @ W + b)   (exact in f32)
    w2f = params["w2_t"] * s1[:, None]
    b2f = t1 @ params["w2_t"] + params["b2"]
    w3f = params["w3_t"] * s2[:, None]
    b3f = t2 @ params["w3_t"] + params["b3"]

    # Pad last Linear to a lane-dense 128-wide output block.
    w3p = jnp.zeros((HID, NC_PAD), jnp.float32).at[:, :NC].set(w3f)
    b3p = jnp.zeros((NC_PAD,), jnp.float32).at[:NC].set(b3f)

    return {
        # LSTM (kept f32: small, on the serial chain)
        "w_ih_row": params["w_ih_t"].reshape(1, 4 * H).astype(jnp.float32),
        "w_hh_t": params["w_hh_t"].astype(jnp.float32),
        "b": (params["b_ih"] + params["b_hh"]).reshape(1, 4 * H).astype(jnp.float32),
        # MLP head: bf16 weights (halved HBM traffic), f32 biases
        "w1_bf16": params["w1_t"].astype(jnp.bfloat16),
        "b1": params["b1"].reshape(1, HID).astype(jnp.float32),
        "w2_bf16": w2f.astype(jnp.bfloat16),
        "b2f": b2f.reshape(1, HID).astype(jnp.float32),
        "w3_bf16": w3p.astype(jnp.bfloat16),
        "b3f": b3p.reshape(1, NC_PAD).astype(jnp.float32),
    }


# ---------------------------------------------------------------------------
# Wrapper
# ---------------------------------------------------------------------------
def rnn_classifier_forward(x, fp, num_classes=10):
    """x: (B, T, 1) float32 (batch_first). Returns logits (B, num_classes)."""
    B, T, I = x.shape
    assert I == 1, "kernel specialised for input_size == 1"
    H = fp["w_hh_t"].shape[0]
    HID = fp["w1_bf16"].shape[1]

    # Time-major (T, B): size-1 input dim dropped; per-step slice in the
    # kernel is a cheap leading-axis index.
    x_tb = x[:, :, 0].T.astype(jnp.float32)

    def vspec(shape):
        return pl.BlockSpec(shape, lambda i: (0,) * len(shape))

    out_pad = pl.pallas_call(
        _fused_lstm_mlp_kernel,
        out_shape=jax.ShapeDtypeStruct((B, NC_PAD), jnp.float32),
        grid=(1,),
        in_specs=[
            vspec((T, B)),                    # x (time-major)
            vspec((1, 4 * H)),                # w_ih row
            vspec((H, 4 * H)),                # w_hh^T
            vspec((1, 4 * H)),                # bias (pre-summed)
            vspec((1, HID)),                  # b1
            vspec((1, HID)),                  # b2 (BN1 folded)
            vspec((1, NC_PAD)),               # b3 (BN2 folded, padded)
            pl.BlockSpec(memory_space=pl.ANY),  # w1 bf16 (manual DMA)
            pl.BlockSpec(memory_space=pl.ANY),  # w2 bf16 (manual DMA)
            pl.BlockSpec(memory_space=pl.ANY),  # w3 bf16 (manual DMA)
        ],
        out_specs=vspec((B, NC_PAD)),
        scratch_shapes=[
            pltpu.VMEM((H, HID), jnp.bfloat16),
            pltpu.VMEM((HID, HID), jnp.bfloat16),
            pltpu.VMEM((HID, NC_PAD), jnp.bfloat16),
            pltpu.SemaphoreType.DMA((3,)),
        ],
        compiler_params=pltpu.CompilerParams(
            dimension_semantics=("arbitrary",)),
    )(x_tb, fp["w_ih_row"], fp["w_hh_t"], fp["b"],
      fp["b1"], fp["b2f"], fp["b3f"],
      fp["w1_bf16"], fp["w2_bf16"], fp["w3_bf16"])

    return out_pad[:, :num_classes]


# ---------------------------------------------------------------------------
# Deterministic parameter init (PyTorch-like uniform ranges, synthetic)
# ---------------------------------------------------------------------------
def init_params(key, input_size=1, hidden_size=32, num_classes=10, mlp_hidden=512):
    H, I, NC, HID = hidden_size, input_size, num_classes, mlp_hidden
    ks = jax.random.split(key, 12)

    def u(k, shape, fan):
        bound = 1.0 / jnp.sqrt(fan)
        return jax.random.uniform(k, shape, jnp.float32, -bound, bound)

    params = {
        # LSTM (weights stored already transposed for kernel use: (in, 4H))
        "w_ih_t": u(ks[0], (I, 4 * H), H),
        "w_hh_t": u(ks[1], (H, 4 * H), H),
        "b_ih":   u(ks[2], (4 * H,), H),
        "b_hh":   u(ks[3], (4 * H,), H),
        # MLP (weights stored as (in_features, out_features))
        "w1_t": u(ks[4], (H, HID), H),
        "b1":   u(ks[5], (HID,), H),
        "w2_t": u(ks[6], (HID, HID), HID),
        "b2":   u(ks[7], (HID,), HID),
        "w3_t": u(ks[8], (HID, NC), HID),
        "b3":   u(ks[9], (NC,), HID),
        # BatchNorm1d defaults (eval-mode running stats)
        "bn1_gamma": jnp.ones((HID,), jnp.float32),
        "bn1_beta":  jnp.zeros((HID,), jnp.float32),
        "bn1_mean":  jnp.zeros((HID,), jnp.float32),
        "bn1_var":   jnp.ones((HID,), jnp.float32),
        "bn2_gamma": jnp.ones((HID,), jnp.float32),
        "bn2_beta":  jnp.zeros((HID,), jnp.float32),
        "bn2_mean":  jnp.zeros((HID,), jnp.float32),
        "bn2_var":   jnp.ones((HID,), jnp.float32),
    }
    return params


if __name__ == "__main__":
    B, T, I = 2, 8, 1          # batch, sequence length, input_size
    H, NC = 32, 10             # hidden_size, num_classes

    key = jax.random.PRNGKey(0)
    k_x, k_p = jax.random.split(key)
    x = jax.random.normal(k_x, (B, T, I), jnp.float32)

    params = init_params(k_p, input_size=I, hidden_size=H, num_classes=NC)
    fparams = fold_params(params)          # one-time prep: BN fold + bf16 + pad

    out = rnn_classifier_forward(x, fparams, num_classes=NC)
    out = jax.block_until_ready(out)
    assert out.shape == (B, NC) and out.dtype == jnp.float32
    print("KERNEL_OK")
</pallas_src>

<mosaic_0001>
module attributes {stable_mosaic.version = 11 : i64} {
  func.func @_fused_lstm_mlp_kernel(%arg0: i32, %arg1: memref<8x2xf32, #tpu.memory_space<vmem>>, %arg2: memref<1x128xf32, #tpu.memory_space<vmem>>, %arg3: memref<32x128xf32, #tpu.memory_space<vmem>>, %arg4: memref<1x128xf32, #tpu.memory_space<vmem>>, %arg5: memref<1x512xf32, #tpu.memory_space<vmem>>, %arg6: memref<1x512xf32, #tpu.memory_space<vmem>>, %arg7: memref<1x128xf32, #tpu.memory_space<vmem>>, %arg8: memref<32x512xbf16, #tpu.memory_space<any>>, %arg9: memref<512x512xbf16, #tpu.memory_space<any>>, %arg10: memref<512x128xbf16, #tpu.memory_space<any>>, %arg11: memref<2x128xf32, #tpu.memory_space<vmem>>, %arg12: memref<32x512xbf16, #tpu.memory_space<vmem>>, %arg13: memref<512x512xbf16, #tpu.memory_space<vmem>>, %arg14: memref<512x128xbf16, #tpu.memory_space<vmem>>, %arg15: memref<3x!tpu.dma_semaphore, #tpu.memory_space<semaphore_mem>>) attributes {dimension_semantics = [#tpu.dimension_semantics<arbitrary>], iteration_bounds = array<i64: 1>, scalar_prefetch = 0 : i64, scratch_operands = 4 : i64, tpu.core_type = #tpu.core_type<tc>, window_params = [{pipeline_mode = #tpu.pipeline_mode<synchronous>, transform_indices = @transform_0, window_bounds = array<i64: 8, 2>}, {pipeline_mode = #tpu.pipeline_mode<synchronous>, transform_indices = @transform_1, window_bounds = array<i64: 1, 128>}, {pipeline_mode = #tpu.pipeline_mode<synchronous>, transform_indices = @transform_2, window_bounds = array<i64: 32, 128>}, {pipeline_mode = #tpu.pipeline_mode<synchronous>, transform_indices = @transform_3, window_bounds = array<i64: 1, 128>}, {pipeline_mode = #tpu.pipeline_mode<synchronous>, transform_indices = @transform_4, window_bounds = array<i64: 1, 512>}, {pipeline_mode = #tpu.pipeline_mode<synchronous>, transform_indices = @transform_5, window_bounds = array<i64: 1, 512>}, {pipeline_mode = #tpu.pipeline_mode<synchronous>, transform_indices = @transform_6, window_bounds = array<i64: 1, 128>}, {}, {}, {}, {pipeline_mode = #tpu.pipeline_mode<synchronous>, transform_indices = @transform_10, window_bounds = array<i64: 2, 128>}]} {
    %c0_i32 = arith.constant 0 : i32
    %0 = tpu.memref_slice %arg15[%c0_i32] : memref<3x!tpu.dma_semaphore, #tpu.memory_space<semaphore_mem>> -> memref<1x!tpu.dma_semaphore, #tpu.memory_space<semaphore_mem>>
    %1 = tpu.memref_squeeze %0 : memref<1x!tpu.dma_semaphore, #tpu.memory_space<semaphore_mem>> -> memref<!tpu.dma_semaphore, #tpu.memory_space<semaphore_mem>>
    tpu.enqueue_dma source(%arg8 : memref<32x512xbf16, #tpu.memory_space<any>>) target(%arg12 : memref<32x512xbf16, #tpu.memory_space<vmem>>) target_semaphore(%1 : memref<!tpu.dma_semaphore, #tpu.memory_space<semaphore_mem>>)
    %c1_i32 = arith.constant 1 : i32
    %2 = tpu.memref_slice %arg15[%c1_i32] : memref<3x!tpu.dma_semaphore, #tpu.memory_space<semaphore_mem>> -> memref<1x!tpu.dma_semaphore, #tpu.memory_space<semaphore_mem>>
    %3 = tpu.memref_squeeze %2 : memref<1x!tpu.dma_semaphore, #tpu.memory_space<semaphore_mem>> -> memref<!tpu.dma_semaphore, #tpu.memory_space<semaphore_mem>>
    tpu.enqueue_dma source(%arg9 : memref<512x512xbf16, #tpu.memory_space<any>>) target(%arg13 : memref<512x512xbf16, #tpu.memory_space<vmem>>) target_semaphore(%3 : memref<!tpu.dma_semaphore, #tpu.memory_space<semaphore_mem>>)
    %c2_i32 = arith.constant 2 : i32
    %4 = tpu.memref_slice %arg15[%c2_i32] : memref<3x!tpu.dma_semaphore, #tpu.memory_space<semaphore_mem>> -> memref<1x!tpu.dma_semaphore, #tpu.memory_space<semaphore_mem>>
    %5 = tpu.memref_squeeze %4 : memref<1x!tpu.dma_semaphore, #tpu.memory_space<semaphore_mem>> -> memref<!tpu.dma_semaphore, #tpu.memory_space<semaphore_mem>>
    tpu.enqueue_dma source(%arg10 : memref<512x128xbf16, #tpu.memory_space<any>>) target(%arg14 : memref<512x128xbf16, #tpu.memory_space<vmem>>) target_semaphore(%5 : memref<!tpu.dma_semaphore, #tpu.memory_space<semaphore_mem>>)
    %c0 = arith.constant 0 : index
    %c0_0 = arith.constant 0 : index
    %6 = vector.load %arg1[%c0, %c0_0] : memref<8x2xf32, #tpu.memory_space<vmem>>, vector<8x2xf32>
    %c0_1 = arith.constant 0 : index
    %c0_2 = arith.constant 0 : index
    %7 = vector.load %arg2[%c0_1, %c0_2] : memref<1x128xf32, #tpu.memory_space<vmem>>, vector<1x128xf32>
    %c0_3 = arith.constant 0 : index
    %c0_4 = arith.constant 0 : index
    %8 = vector.load %arg3[%c0_3, %c0_4] : memref<32x128xf32, #tpu.memory_space<vmem>>, vector<32x128xf32>
    %c0_5 = arith.constant 0 : index
    %c0_6 = arith.constant 0 : index
    %9 = vector.load %arg4[%c0_5, %c0_6] : memref<1x128xf32, #tpu.memory_space<vmem>>, vector<1x128xf32>
    %10 = vector.shape_cast %6 : vector<8x2xf32> to vector<8x2x1xf32>
    %11 = vector.shape_cast %7 : vector<1x128xf32> to vector<1x1x128xf32>
    %12 = vector.broadcast %10 : vector<8x2x1xf32> to vector<8x2x128xf32>
    %13 = vector.broadcast %11 : vector<1x1x128xf32> to vector<8x2x128xf32>
    %14 = arith.mulf %12, %13 : vector<8x2x128xf32>
    %15 = vector.shape_cast %9 : vector<1x128xf32> to vector<1x1x128xf32>
    %16 = vector.broadcast %15 : vector<1x1x128xf32> to vector<8x2x128xf32>
    %17 = arith.addf %14, %16 : vector<8x2x128xf32>
    %18 = tpu.iota {dimensions = array<i32: 1>} : vector<2x128xi32>
    %c64_i32 = arith.constant 64 : i32
    %19 = vector.broadcast %c64_i32 : i32 to vector<2x128xi32>
    %20 = arith.cmpi sge, %18, %19 : vector<2x128xi32>
    %c96_i32 = arith.constant 96 : i32
    %21 = vector.broadcast %c96_i32 : i32 to vector<2x128xi32>
    %22 = arith.cmpi slt, %18, %21 : vector<2x128xi32>
    %23 = arith.andi %20, %22 : vector<2x128xi1>
    %cst = arith.constant 1.000000e+00 : f32
    %cst_7 = arith.constant 5.000000e-01 : f32
    %24 = vector.broadcast %cst : f32 to vector<2x128xf32>
    %25 = vector.broadcast %cst_7 : f32 to vector<2x128xf32>
    %26 = arith.select %23, %24, %25 : vector<2x128xi1>, vector<2x128xf32>
    %cst_8 = arith.constant 0.000000e+00 : f32
    %cst_9 = arith.constant 5.000000e-01 : f32
    %27 = vector.broadcast %cst_8 : f32 to vector<2x128xf32>
    %28 = vector.broadcast %cst_9 : f32 to vector<2x128xf32>
    %29 = arith.select %23, %27, %28 : vector<2x128xi1>, vector<2x128xf32>
    %cst_10 = arith.constant 0.000000e+00 : f32
    %30 = vector.broadcast %cst_10 : f32 to vector<2x32xf32>
    %cst_11 = arith.constant 0.000000e+00 : f32
    %31 = vector.broadcast %cst_11 : f32 to vector<2x32xf32>
    %32 = vector.extract_strided_slice %17 {offsets = [0, 0, 0], sizes = [1, 2, 128], strides = [1, 1, 1]} : vector<8x2x128xf32> to vector<1x2x128xf32>
    %33 = vector.shape_cast %32 : vector<1x2x128xf32> to vector<2x128xf32>
    %cst_12 = arith.constant dense<0.000000e+00> : vector<2x128xf32>
    %34 = tpu.matmul %30, %8, %cst_12 {dimension_numbers = #tpu.dot_dimension_numbers<[1], [0], [0], [1], [0, 0, 1, 1], [], []>} : vector<2x32xf32>, vector<32x128xf32>, vector<2x128xf32> -> vector<2x128xf32>
    %35 = arith.addf %33, %34 : vector<2x128xf32>
    %36 = arith.mulf %35, %26 : vector<2x128xf32>
    %37 = math.tanh %36 : vector<2x128xf32>
    %38 = arith.mulf %37, %26 : vector<2x128xf32>
    %39 = arith.addf %38, %29 : vector<2x128xf32>
    %40 = vector.extract_strided_slice %39 {offsets = [0, 0], sizes = [2, 32], strides = [1, 1]} : vector<2x128xf32> to vector<2x32xf32>
    %41 = vector.extract_strided_slice %39 {offsets = [0, 32], sizes = [2, 32], strides = [1, 1]} : vector<2x128xf32> to vector<2x32xf32>
    %42 = vector.extract_strided_slice %39 {offsets = [0, 64], sizes = [2, 32], strides = [1, 1]} : vector<2x128xf32> to vector<2x32xf32>
    %43 = vector.extract_strided_slice %39 {offsets = [0, 96], sizes = [2, 32], strides = [1, 1]} : vector<2x128xf32> to vector<2x32xf32>
    %44 = arith.mulf %41, %31 : vector<2x32xf32>
    %45 = arith.mulf %40, %42 : vector<2x32xf32>
    %46 = arith.addf %44, %45 : vector<2x32xf32>
    %47 = math.tanh %46 : vector<2x32xf32>
    %48 = arith.mulf %43, %47 : vector<2x32xf32>
    %49 = vector.extract_strided_slice %17 {offsets = [1, 0, 0], sizes = [1, 2, 128], strides = [1, 1, 1]} : vector<8x2x128xf32> to vector<1x2x128xf32>
    %50 = vector.shape_cast %49 : vector<1x2x128xf32> to vector<2x128xf32>
    %cst_13 = arith.constant dense<0.000000e+00> : vector<2x128xf32>
    %51 = tpu.matmul %48, %8, %cst_13 {dimension_numbers = #tpu.dot_dimension_numbers<[1], [0], [0], [1], [0, 0, 1, 1], [], []>} : vector<2x32xf32>, vector<32x128xf32>, vector<2x128xf32> -> vector<2x128xf32>
    %52 = arith.addf %50, %51 : vector<2x128xf32>
    %53 = arith.mulf %52, %26 : vector<2x128xf32>
    %54 = math.tanh %53 : vector<2x128xf32>
    %55 = arith.mulf %54, %26 : vector<2x128xf32>
    %56 = arith.addf %55, %29 : vector<2x128xf32>
    %57 = vector.extract_strided_slice %56 {offsets = [0, 0], sizes = [2, 32], strides = [1, 1]} : vector<2x128xf32> to vector<2x32xf32>
    %58 = vector.extract_strided_slice %56 {offsets = [0, 32], sizes = [2, 32], strides = [1, 1]} : vector<2x128xf32> to vector<2x32xf32>
    %59 = vector.extract_strided_slice %56 {offsets = [0, 64], sizes = [2, 32], strides = [1, 1]} : vector<2x128xf32> to vector<2x32xf32>
    %60 = vector.extract_strided_slice %56 {offsets = [0, 96], sizes = [2, 32], strides = [1, 1]} : vector<2x128xf32> to vector<2x32xf32>
    %61 = arith.mulf %58, %46 : vector<2x32xf32>
    %62 = arith.mulf %57, %59 : vector<2x32xf32>
    %63 = arith.addf %61, %62 : vector<2x32xf32>
    %64 = math.tanh %63 : vector<2x32xf32>
    %65 = arith.mulf %60, %64 : vector<2x32xf32>
    %66 = vector.extract_strided_slice %17 {offsets = [2, 0, 0], sizes = [1, 2, 128], strides = [1, 1, 1]} : vector<8x2x128xf32> to vector<1x2x128xf32>
    %67 = vector.shape_cast %66 : vector<1x2x128xf32> to vector<2x128xf32>
    %cst_14 = arith.constant dense<0.000000e+00> : vector<2x128xf32>
    %68 = tpu.matmul %65, %8, %cst_14 {dimension_numbers = #tpu.dot_dimension_numbers<[1], [0], [0], [1], [0, 0, 1, 1], [], []>} : vector<2x32xf32>, vector<32x128xf32>, vector<2x128xf32> -> vector<2x128xf32>
    %69 = arith.addf %67, %68 : vector<2x128xf32>
    %70 = arith.mulf %69, %26 : vector<2x128xf32>
    %71 = math.tanh %70 : vector<2x128xf32>
    %72 = arith.mulf %71, %26 : vector<2x128xf32>
    %73 = arith.addf %72, %29 : vector<2x128xf32>
    %74 = vector.extract_strided_slice %73 {offsets = [0, 0], sizes = [2, 32], strides = [1, 1]} : vector<2x128xf32> to vector<2x32xf32>
    %75 = vector.extract_strided_slice %73 {offsets = [0, 32], sizes = [2, 32], strides = [1, 1]} : vector<2x128xf32> to vector<2x32xf32>
    %76 = vector.extract_strided_slice %73 {offsets = [0, 64], sizes = [2, 32], strides = [1, 1]} : vector<2x128xf32> to vector<2x32xf32>
    %77 = vector.extract_strided_slice %73 {offsets = [0, 96], sizes = [2, 32], strides = [1, 1]} : vector<2x128xf32> to vector<2x32xf32>
    %78 = arith.mulf %75, %63 : vector<2x32xf32>
    %79 = arith.mulf %74, %76 : vector<2x32xf32>
    %80 = arith.addf %78, %79 : vector<2x32xf32>
    %81 = math.tanh %80 : vector<2x32xf32>
    %82 = arith.mulf %77, %81 : vector<2x32xf32>
    %83 = vector.extract_strided_slice %17 {offsets = [3, 0, 0], sizes = [1, 2, 128], strides = [1, 1, 1]} : vector<8x2x128xf32> to vector<1x2x128xf32>
    %84 = vector.shape_cast %83 : vector<1x2x128xf32> to vector<2x128xf32>
    %cst_15 = arith.constant dense<0.000000e+00> : vector<2x128xf32>
    %85 = tpu.matmul %82, %8, %cst_15 {dimension_numbers = #tpu.dot_dimension_numbers<[1], [0], [0], [1], [0, 0, 1, 1], [], []>} : vector<2x32xf32>, vector<32x128xf32>, vector<2x128xf32> -> vector<2x128xf32>
    %86 = arith.addf %84, %85 : vector<2x128xf32>
    %87 = arith.mulf %86, %26 : vector<2x128xf32>
    %88 = math.tanh %87 : vector<2x128xf32>
    %89 = arith.mulf %88, %26 : vector<2x128xf32>
    %90 = arith.addf %89, %29 : vector<2x128xf32>
    %91 = vector.extract_strided_slice %90 {offsets = [0, 0], sizes = [2, 32], strides = [1, 1]} : vector<2x128xf32> to vector<2x32xf32>
    %92 = vector.extract_strided_slice %90 {offsets = [0, 32], sizes = [2, 32], strides = [1, 1]} : vector<2x128xf32> to vector<2x32xf32>
    %93 = vector.extract_strided_slice %90 {offsets = [0, 64], sizes = [2, 32], strides = [1, 1]} : vector<2x128xf32> to vector<2x32xf32>
    %94 = vector.extract_strided_slice %90 {offsets = [0, 96], sizes = [2, 32], strides = [1, 1]} : vector<2x128xf32> to vector<2x32xf32>
    %95 = arith.mulf %92, %80 : vector<2x32xf32>
    %96 = arith.mulf %91, %93 : vector<2x32xf32>
    %97 = arith.addf %95, %96 : vector<2x32xf32>
    %98 = math.tanh %97 : vector<2x32xf32>
    %99 = arith.mulf %94, %98 : vector<2x32xf32>
    %100 = vector.extract_strided_slice %17 {offsets = [4, 0, 0], sizes = [1, 2, 128], strides = [1, 1, 1]} : vector<8x2x128xf32> to vector<1x2x128xf32>
    %101 = vector.shape_cast %100 : vector<1x2x128xf32> to vector<2x128xf32>
    %cst_16 = arith.constant dense<0.000000e+00> : vector<2x128xf32>
    %102 = tpu.matmul %99, %8, %cst_16 {dimension_numbers = #tpu.dot_dimension_numbers<[1], [0], [0], [1], [0, 0, 1, 1], [], []>} : vector<2x32xf32>, vector<32x128xf32>, vector<2x128xf32> -> vector<2x128xf32>
    %103 = arith.addf %101, %102 : vector<2x128xf32>
    %104 = arith.mulf %103, %26 : vector<2x128xf32>
    %105 = math.tanh %104 : vector<2x128xf32>
    %106 = arith.mulf %105, %26 : vector<2x128xf32>
    %107 = arith.addf %106, %29 : vector<2x128xf32>
    %108 = vector.extract_strided_slice %107 {offsets = [0, 0], sizes = [2, 32], strides = [1, 1]} : vector<2x128xf32> to vector<2x32xf32>
    %109 = vector.extract_strided_slice %107 {offsets = [0, 32], sizes = [2, 32], strides = [1, 1]} : vector<2x128xf32> to vector<2x32xf32>
    %110 = vector.extract_strided_slice %107 {offsets = [0, 64], sizes = [2, 32], strides = [1, 1]} : vector<2x128xf32> to vector<2x32xf32>
    %111 = vector.extract_strided_slice %107 {offsets = [0, 96], sizes = [2, 32], strides = [1, 1]} : vector<2x128xf32> to vector<2x32xf32>
    %112 = arith.mulf %109, %97 : vector<2x32xf32>
    %113 = arith.mulf %108, %110 : vector<2x32xf32>
    %114 = arith.addf %112, %113 : vector<2x32xf32>
    %115 = math.tanh %114 : vector<2x32xf32>
    %116 = arith.mulf %111, %115 : vector<2x32xf32>
    %117 = vector.extract_strided_slice %17 {offsets = [5, 0, 0], sizes = [1, 2, 128], strides = [1, 1, 1]} : vector<8x2x128xf32> to vector<1x2x128xf32>
    %118 = vector.shape_cast %117 : vector<1x2x128xf32> to vector<2x128xf32>
    %cst_17 = arith.constant dense<0.000000e+00> : vector<2x128xf32>
    %119 = tpu.matmul %116, %8, %cst_17 {dimension_numbers = #tpu.dot_dimension_numbers<[1], [0], [0], [1], [0, 0, 1, 1], [], []>} : vector<2x32xf32>, vector<32x128xf32>, vector<2x128xf32> -> vector<2x128xf32>
    %120 = arith.addf %118, %119 : vector<2x128xf32>
    %121 = arith.mulf %120, %26 : vector<2x128xf32>
    %122 = math.tanh %121 : vector<2x128xf32>
    %123 = arith.mulf %122, %26 : vector<2x128xf32>
    %124 = arith.addf %123, %29 : vector<2x128xf32>
    %125 = vector.extract_strided_slice %124 {offsets = [0, 0], sizes = [2, 32], strides = [1, 1]} : vector<2x128xf32> to vector<2x32xf32>
    %126 = vector.extract_strided_slice %124 {offsets = [0, 32], sizes = [2, 32], strides = [1, 1]} : vector<2x128xf32> to vector<2x32xf32>
    %127 = vector.extract_strided_slice %124 {offsets = [0, 64], sizes = [2, 32], strides = [1, 1]} : vector<2x128xf32> to vector<2x32xf32>
    %128 = vector.extract_strided_slice %124 {offsets = [0, 96], sizes = [2, 32], strides = [1, 1]} : vector<2x128xf32> to vector<2x32xf32>
    %129 = arith.mulf %126, %114 : vector<2x32xf32>
    %130 = arith.mulf %125, %127 : vector<2x32xf32>
    %131 = arith.addf %129, %130 : vector<2x32xf32>
    %132 = math.tanh %131 : vector<2x32xf32>
    %133 = arith.mulf %128, %132 : vector<2x32xf32>
    %134 = vector.extract_strided_slice %17 {offsets = [6, 0, 0], sizes = [1, 2, 128], strides = [1, 1, 1]} : vector<8x2x128xf32> to vector<1x2x128xf32>
    %135 = vector.shape_cast %134 : vector<1x2x128xf32> to vector<2x128xf32>
    %cst_18 = arith.constant dense<0.000000e+00> : vector<2x128xf32>
    %136 = tpu.matmul %133, %8, %cst_18 {dimension_numbers = #tpu.dot_dimension_numbers<[1], [0], [0], [1], [0, 0, 1, 1], [], []>} : vector<2x32xf32>, vector<32x128xf32>, vector<2x128xf32> -> vector<2x128xf32>
    %137 = arith.addf %135, %136 : vector<2x128xf32>
    %138 = arith.mulf %137, %26 : vector<2x128xf32>
    %139 = math.tanh %138 : vector<2x128xf32>
    %140 = arith.mulf %139, %26 : vector<2x128xf32>
    %141 = arith.addf %140, %29 : vector<2x128xf32>
    %142 = vector.extract_strided_slice %141 {offsets = [0, 0], sizes = [2, 32], strides = [1, 1]} : vector<2x128xf32> to vector<2x32xf32>
    %143 = vector.extract_strided_slice %141 {offsets = [0, 32], sizes = [2, 32], strides = [1, 1]} : vector<2x128xf32> to vector<2x32xf32>
    %144 = vector.extract_strided_slice %141 {offsets = [0, 64], sizes = [2, 32], strides = [1, 1]} : vector<2x128xf32> to vector<2x32xf32>
    %145 = vector.extract_strided_slice %141 {offsets = [0, 96], sizes = [2, 32], strides = [1, 1]} : vector<2x128xf32> to vector<2x32xf32>
    %146 = arith.mulf %143, %131 : vector<2x32xf32>
    %147 = arith.mulf %142, %144 : vector<2x32xf32>
    %148 = arith.addf %146, %147 : vector<2x32xf32>
    %149 = math.tanh %148 : vector<2x32xf32>
    %150 = arith.mulf %145, %149 : vector<2x32xf32>
    %151 = vector.extract_strided_slice %17 {offsets = [7, 0, 0], sizes = [1, 2, 128], strides = [1, 1, 1]} : vector<8x2x128xf32> to vector<1x2x128xf32>
    %152 = vector.shape_cast %151 : vector<1x2x128xf32> to vector<2x128xf32>
    %cst_19 = arith.constant dense<0.000000e+00> : vector<2x128xf32>
    %153 = tpu.matmul %150, %8, %cst_19 {dimension_numbers = #tpu.dot_dimension_numbers<[1], [0], [0], [1], [0, 0, 1, 1], [], []>} : vector<2x32xf32>, vector<32x128xf32>, vector<2x128xf32> -> vector<2x128xf32>
    %154 = arith.addf %152, %153 : vector<2x128xf32>
    %155 = arith.mulf %154, %26 : vector<2x128xf32>
    %156 = math.tanh %155 : vector<2x128xf32>
    %157 = arith.mulf %156, %26 : vector<2x128xf32>
    %158 = arith.addf %157, %29 : vector<2x128xf32>
    %159 = vector.extract_strided_slice %158 {offsets = [0, 0], sizes = [2, 32], strides = [1, 1]} : vector<2x128xf32> to vector<2x32xf32>
    %160 = vector.extract_strided_slice %158 {offsets = [0, 32], sizes = [2, 32], strides = [1, 1]} : vector<2x128xf32> to vector<2x32xf32>
    %161 = vector.extract_strided_slice %158 {offsets = [0, 64], sizes = [2, 32], strides = [1, 1]} : vector<2x128xf32> to vector<2x32xf32>
    %162 = vector.extract_strided_slice %158 {offsets = [0, 96], sizes = [2, 32], strides = [1, 1]} : vector<2x128xf32> to vector<2x32xf32>
    %163 = arith.mulf %160, %148 : vector<2x32xf32>
    %164 = arith.mulf %159, %161 : vector<2x32xf32>
    %165 = arith.addf %163, %164 : vector<2x32xf32>
    %166 = math.tanh %165 : vector<2x32xf32>
    %167 = arith.mulf %162, %166 : vector<2x32xf32>
    %c0_i32_20 = arith.constant 0 : i32
    %168 = tpu.memref_slice %arg15[%c0_i32_20] : memref<3x!tpu.dma_semaphore, #tpu.memory_space<semaphore_mem>> -> memref<1x!tpu.dma_semaphore, #tpu.memory_space<semaphore_mem>>
    %169 = tpu.memref_squeeze %168 : memref<1x!tpu.dma_semaphore, #tpu.memory_space<semaphore_mem>> -> memref<!tpu.dma_semaphore, #tpu.memory_space<semaphore_mem>>
    tpu.wait_dma2 semaphore(%169 : memref<!tpu.dma_semaphore, #tpu.memory_space<semaphore_mem>>) src(%arg8 : memref<32x512xbf16, #tpu.memory_space<any>>) dst(%arg12 : memref<32x512xbf16, #tpu.memory_space<vmem>>)
    %170 = arith.truncf %167 : vector<2x32xf32> to vector<2x32xbf16>
    %c0_21 = arith.constant 0 : index
    %c0_22 = arith.constant 0 : index
    %171 = vector.load %arg12[%c0_21, %c0_22] : memref<32x512xbf16, #tpu.memory_space<vmem>>, vector<32x512xbf16>
    %cst_23 = arith.constant dense<0.000000e+00> : vector<2x512xf32>
    %172 = tpu.matmul %170, %171, %cst_23 {dimension_numbers = #tpu.dot_dimension_numbers<[1], [0], [0], [1], [0, 0, 1, 1], [], []>} : vector<2x32xbf16>, vector<32x512xbf16>, vector<2x512xf32> -> vector<2x512xf32>
    %c0_24 = arith.constant 0 : index
    %c0_25 = arith.constant 0 : index
    %173 = vector.load %arg5[%c0_24, %c0_25] : memref<1x512xf32, #tpu.memory_space<vmem>>, vector<1x512xf32>
    %174 = vector.broadcast %173 : vector<1x512xf32> to vector<2x512xf32>
    %175 = arith.addf %172, %174 : vector<2x512xf32>
    %cst_26 = arith.constant 0.000000e+00 : f32
    %176 = vector.broadcast %cst_26 : f32 to vector<2x512xf32>
    %177 = arith.maximumf %175, %176 : vector<2x512xf32>
    %c1_i32_27 = arith.constant 1 : i32
    %178 = tpu.memref_slice %arg15[%c1_i32_27] : memref<3x!tpu.dma_semaphore, #tpu.memory_space<semaphore_mem>> -> memref<1x!tpu.dma_semaphore, #tpu.memory_space<semaphore_mem>>
    %179 = tpu.memref_squeeze %178 : memref<1x!tpu.dma_semaphore, #tpu.memory_space<semaphore_mem>> -> memref<!tpu.dma_semaphore, #tpu.memory_space<semaphore_mem>>
    tpu.wait_dma2 semaphore(%179 : memref<!tpu.dma_semaphore, #tpu.memory_space<semaphore_mem>>) src(%arg9 : memref<512x512xbf16, #tpu.memory_space<any>>) dst(%arg13 : memref<512x512xbf16, #tpu.memory_space<vmem>>)
    %180 = arith.truncf %177 : vector<2x512xf32> to vector<2x512xbf16>
    %c0_28 = arith.constant 0 : index
    %c0_29 = arith.constant 0 : index
    %181 = vector.load %arg13[%c0_28, %c0_29] : memref<512x512xbf16, #tpu.memory_space<vmem>>, vector<512x512xbf16>
    %cst_30 = arith.constant dense<0.000000e+00> : vector<2x512xf32>
    %182 = tpu.matmul %180, %181, %cst_30 {dimension_numbers = #tpu.dot_dimension_numbers<[1], [0], [0], [1], [0, 0, 1, 1], [], []>} : vector<2x512xbf16>, vector<512x512xbf16>, vector<2x512xf32> -> vector<2x512xf32>
    %c0_31 = arith.constant 0 : index
    %c0_32 = arith.constant 0 : index
    %183 = vector.load %arg6[%c0_31, %c0_32] : memref<1x512xf32, #tpu.memory_space<vmem>>, vector<1x512xf32>
    %184 = vector.broadcast %183 : vector<1x512xf32> to vector<2x512xf32>
    %185 = arith.addf %182, %184 : vector<2x512xf32>
    %cst_33 = arith.constant 0.000000e+00 : f32
    %186 = vector.broadcast %cst_33 : f32 to vector<2x512xf32>
    %187 = arith.maximumf %185, %186 : vector<2x512xf32>
    %c2_i32_34 = arith.constant 2 : i32
    %188 = tpu.memref_slice %arg15[%c2_i32_34] : memref<3x!tpu.dma_semaphore, #tpu.memory_space<semaphore_mem>> -> memref<1x!tpu.dma_semaphore, #tpu.memory_space<semaphore_mem>>
    %189 = tpu.memref_squeeze %188 : memref<1x!tpu.dma_semaphore, #tpu.memory_space<semaphore_mem>> -> memref<!tpu.dma_semaphore, #tpu.memory_space<semaphore_mem>>
    tpu.wait_dma2 semaphore(%189 : memref<!tpu.dma_semaphore, #tpu.memory_space<semaphore_mem>>) src(%arg10 : memref<512x128xbf16, #tpu.memory_space<any>>) dst(%arg14 : memref<512x128xbf16, #tpu.memory_space<vmem>>)
    %190 = arith.truncf %187 : vector<2x512xf32> to vector<2x512xbf16>
    %c0_35 = arith.constant 0 : index
    %c0_36 = arith.constant 0 : index
    %191 = vector.load %arg14[%c0_35, %c0_36] : memref<512x128xbf16, #tpu.memory_space<vmem>>, vector<512x128xbf16>
    %cst_37 = arith.constant dense<0.000000e+00> : vector<2x128xf32>
    %192 = tpu.matmul %190, %191, %cst_37 {dimension_numbers = #tpu.dot_dimension_numbers<[1], [0], [0], [1], [0, 0, 1, 1], [], []>} : vector<2x512xbf16>, vector<512x128xbf16>, vector<2x128xf32> -> vector<2x128xf32>
    %c0_38 = arith.constant 0 : index
    %c0_39 = arith.constant 0 : index
    %193 = vector.load %arg7[%c0_38, %c0_39] : memref<1x128xf32, #tpu.memory_space<vmem>>, vector<1x128xf32>
    %194 = vector.broadcast %193 : vector<1x128xf32> to vector<2x128xf32>
    %195 = arith.addf %192, %194 : vector<2x128xf32>
    %c0_40 = arith.constant 0 : index
    %c0_41 = arith.constant 0 : index
    %196 = vector.load %arg11[%c0_40, %c0_41] : memref<2x128xf32, #tpu.memory_space<vmem>>, vector<2x128xf32>
    tpu.vector_store %arg11[%c0_40, %c0_41], %195 {strides = array<i32>} : memref<2x128xf32, #tpu.memory_space<vmem>>, vector<2x128xf32>,
    return
  }
  func.func @transform_0(%arg0: i32) -> (i32, i32) {
    %c0_i32 = arith.constant 0 : i32
    %c0_i32_0 = arith.constant 0 : i32
    %c0_i32_1 = arith.constant 0 : i32
    return %c0_i32, %c0_i32_0 : i32, i32
  }
  func.func @transform_1(%arg0: i32) -> (i32, i32) {
    %c0_i32 = arith.constant 0 : i32
    %c0_i32_0 = arith.constant 0 : i32
    %c0_i32_1 = arith.constant 0 : i32
    return %c0_i32, %c0_i32_0 : i32, i32
  }
  func.func @transform_2(%arg0: i32) -> (i32, i32) {
    %c0_i32 = arith.constant 0 : i32
    %c0_i32_0 = arith.constant 0 : i32
    %c0_i32_1 = arith.constant 0 : i32
    return %c0_i32, %c0_i32_0 : i32, i32
  }
  func.func @transform_3(%arg0: i32) -> (i32, i32) {
    %c0_i32 = arith.constant 0 : i32
    %c0_i32_0 = arith.constant 0 : i32
    %c0_i32_1 = arith.constant 0 : i32
    return %c0_i32, %c0_i32_0 : i32, i32
  }
  func.func @transform_4(%arg0: i32) -> (i32, i32) {
    %c0_i32 = arith.constant 0 : i32
    %c0_i32_0 = arith.constant 0 : i32
    %c0_i32_1 = arith.constant 0 : i32
    return %c0_i32, %c0_i32_0 : i32, i32
  }
  func.func @transform_5(%arg0: i32) -> (i32, i32) {
    %c0_i32 = arith.constant 0 : i32
    %c0_i32_0 = arith.constant 0 : i32
    %c0_i32_1 = arith.constant 0 : i32
    return %c0_i32, %c0_i32_0 : i32, i32
  }
  func.func @transform_6(%arg0: i32) -> (i32, i32) {
    %c0_i32 = arith.constant 0 : i32
    %c0_i32_0 = arith.constant 0 : i32
    %c0_i32_1 = arith.constant 0 : i32
    return %c0_i32, %c0_i32_0 : i32, i32
  }
  func.func @transform_10(%arg0: i32) -> (i32, i32) {
    %c0_i32 = arith.constant 0 : i32
    %c0_i32_0 = arith.constant 0 : i32
    %c0_i32_1 = arith.constant 0 : i32
    return %c0_i32, %c0_i32_0 : i32, i32
  }
}

</mosaic_0001>

<bundles_post_ra>
// kernel: tpu_custom_call.1
= control target key start
LH: loop header
LB: loop body
LE: loop exit
PB: predicated region body
PF: predicated region fallthrough
CT: control target
= control target key end

     0   :  { %15 = vsyncpa [#allocation7], 0  ;;  %s2353_s0 = inlined_call_operand.vmem [shape: f32[8,2], index: 0, kind: input, shape index: {}]   ;;  %s2354_s1 = inlined_call_operand.vmem [shape: f32[1,128], index: 1, kind: input, shape index: {}]   ;;  %s2355_s2 = inlined_call_operand.hbm [shape: f32[32,128], index: 2, kind: input, shape index: {}]   ;;  %s2356_s3 = inlined_call_operand.vmem [shape: f32[1,128], index: 3, kind: input, shape index: {}]   ;;  %s2357_s4 = inlined_call_operand.vmem [shape: f32[1,512], index: 4, kind: input, shape index: {}]   ;;  %s2358_s5 = inlined_call_operand.vmem [shape: f32[1,512], index: 5, kind: input, shape index: {}]   ;;  %s2359_s6 = inlined_call_operand.vmem [shape: f32[1,128], index: 6, kind: input, shape index: {}]   ;;  %s2360_s7 = inlined_call_operand.hbm [shape: bf16[32,512], index: 7, kind: input, shape index: {}]   ;;  %s2361_s8 = inlined_call_operand.hbm [shape: bf16[512,512], index: 8, kind: input, shape index: {}]   ;;  %s2362_s9 = inlined_call_operand.hbm [shape: bf16[512,128], index: 9, kind: input, shape index: {}]   ;;  %s2363_s10 = inlined_call_operand.hbm [shape: f32[2,128], index: 10, kind: output, shape index: {}]  }
   0x1   :  { %16 = vsyncpa [#allocation8], 0  ;;  %s1996_s13 = smov [#allocation6]   ;;  %s1920_s17 = scalar_lea.hbm %s2355_s2, 512 }
   0x2   :  { %s26_s14 = sshll.u32 %s1996_s13, 4  ;;  %p1921_p0 = scmp.ne.s32.totalorder %s2355_s2, %s1920_s17  ;;  %s27_s14 = int_to_ptr.vmem [resolvable:$true] %s26_s14 }
   0x3   :  { %p1924_p1 = scmp.lt.u32.totalorder %s1920_s17, %s2355_s2 }
   0x5   :  { %p1926_p2 = pnand %p1924_p1, %p1921_p0 }
   0x7   :  { %1929 = shalt.err (!%p1926_p2)
}
   0x8   :  { %s1930_s22 = scalar_lea.vmem %s27_s14, 512  ;;  %p1935_p4 = scmp.lt.s32.totalorder %s27_s14, %s27_s14 }
   0x9   :  { %p1931_p3 = scmp.ne.s32.totalorder %s27_s14, %s1930_s22  ;;  %p1936_p5 = scmp.lt.s32.totalorder %s1930_s22, %s1930_s22 }
   0xb   :  { %p1937_p6 = por %p1936_p5, %p1935_p4 }
   0xd   :  { %p1938_p7 = pnand %p1937_p6, %p1931_p3 }
   0xf   :  { %1941 = shalt.err (!%p1938_p7)
}
  0x10   :  { %s1997_s23 = smov 128   ;;  %s1998_s24 = smov 8  }
  0x11   :  { %32 = dma.hbm_to_vmem [thread:$0]  %s2355_s2, 512, %s27_s14, [#allocation7], %s1997_s23, %s1997_s23, %s1998_s24  }
  0x12   :  { %1986 = dma.done.wait [#allocation7], 512  }
  0x13   :  { %1987 = vsyncadd [#allocation7], 4294966784  ;;  %s49_s27 = sld [smem:[#allocation0]]   ;;  %s1999_s28 = smov 64   ;;  %v2000_v0 = vmov 0.0|0.0   ;;  %vm2002_vm0 = vmmov 0   ;;  %v134_v2 = vlaneseq }
  0x14   :  { %67 = sst [smem:[#allocation11 + $0x3]] %s1999_s28  ;;  %1806 = vmatprep.subr.bf16.mxu0 %v2000_v0  ;;  %1812 = vmatprep.subr.bf16.mxu1 %v2000_v0  ;;  %s2001_s29 = smov [#allocation2]   ;;  %v2003_v1 = vmov 0.0   ;;  %v2013_v19 = vmov 0.5   ;;  %vm225_vm4 = vcmask 261120  }
  0x15   :  { %69 = sst [smem:[#allocation11 + $0x4]] %s1997_s23  ;;  %s57_s30 = sshll.u32 %s2001_s29, 4  ;;  %1726 = vmatprep.mubr.msk.f32.mxu0 %vm2002_vm0, %v2003_v1  ;;  %1737 = vmatprep.mubr.msk.f32.mxu1 %vm2002_vm0, %v2003_v1  ;;  %v2105_v3 = vshrl.u32 %v134_v2, 7  ;;  %v219_v15 = vand.u32 127, %v134_v2  ;;  %s58_s30 = int_to_ptr.vmem [resolvable:$true] %s57_s30 }
  0x16   :  { %75 = sst [smem:[#allocation11 + $0x7]] %s1999_s28  ;;  %s2004_s2 = smov 512  }
  0x17   :  { %61 = sst [smem:[#allocation11]] %s2004_s2  ;;  %s2005_s12 = smov 4   ;;  %v2108_v4 = vsub.s32 0, %v2105_v3  ;;  %vm220_vm1 = vcmp.ge.s32.totalorder %v219_v15, 64  ;;  %vm221_vm2 = vcmp.lt.s32.totalorder %v219_v15, 96  ;;  %v2159_v35 = vsub.s32 1, %v2105_v3 }
  0x18   :  { %63 = sst [smem:[#allocation11 + $0x1]] %s2004_s2  ;;  %s2006_s14 = smov 2   ;;  %vm222_vm3 = vmand %vm220_vm1, %vm221_vm2  ;;  %v2180_v56 = vsub.s32 2, %v2105_v3 }
  0x19   :  { %s1615_s11 = sshll.u32 %s49_s27, 26  ;;  %65 = sst [smem:[#allocation11 + $0x2]] %s2005_s12  ;;  %v2148_v20 = vsel %vm222_vm3, 1.0, %v2013_v19  ;;  %v2151_v26 = vsel %vm222_vm3, 0.0, %v2013_v19 }
  0x1a   :  { %s1616_s13 = sadd.s32 134217728, %s1615_s11  ;;  %71 = sst [smem:[#allocation11 + $0x5]] %s2006_s14 }
  0x1b   :  { %s2007_s15 = smov 256   ;;  %77 = sst [smem:[#allocation11 + $0x8]] %s2005_s12 }
  0x1c   :  { %73 = sst [smem:[#allocation11 + $0x6]] %s2007_s15  ;;  %s2008_s16 = smov [#allocation5]  }
  0x1d   :  { %s2009_s17 = smov [#allocation10]   ;;  %s2010_s20 = smov [#allocation3]  }
  0x1e   :  { %79 = dma.general %s2360_s7, 1024, %s58_s30, %s2008_s16, %s2009_s17, [#allocation11], %s1616_s13, 0  }
  0x1f   :  { %96 = sst [smem:[#allocation13]] %s2004_s2  ;;  %s92_s21 = sshll.u32 %s2010_s20, 4  ;;  %s93_s21 = int_to_ptr.vmem [resolvable:$true] %s92_s21 }
  0x20   :  { %98 = sst [smem:[#allocation13 + $0x1]] %s2004_s2  ;;  %s2011_s22 = smov [#allocation5 + $0x1]  }
  0x21   :  { %100 = sst [smem:[#allocation13 + $0x2]] %s2005_s12  ;;  %s2012_s24 = smov [#allocation12]  }
  0x22   :  { %102 = sst [smem:[#allocation13 + $0x3]] %s1999_s28 }
  0x23   :  { %104 = sst [smem:[#allocation13 + $0x4]] %s1997_s23 }
  0x24   :  { %106 = sst [smem:[#allocation13 + $0x5]] %s2006_s14 }
  0x25   :  { %108 = sst [smem:[#allocation13 + $0x6]] %s2007_s15 }
  0x26   :  { %110 = sst [smem:[#allocation13 + $0x7]] %s1999_s28 }
  0x27   :  { %112 = sst [smem:[#allocation13 + $0x8]] %s2005_s12  ;;  %s1942_s12 = scalar_lea.hbm %s2362_s9, 4096 }
  0x28   :  { %114 = dma.general %s2361_s8, 16384, %s93_s21, %s2011_s22, %s2012_s24, [#allocation13], %s1616_s13, 0  }
  0x29   :  { %v129_v5 = vld [vmem:[#allocation6] sm:$0xff]  ;;  %v130_v6 = vld [vmem:[#allocation6 + $0x8] sm:$0xff]  ;;  %v131_v7 = vld [vmem:[#allocation6 + $0x10] sm:$0xff]  ;;  %p1943_p8 = scmp.ne.s32.totalorder %s2362_s9, %s1942_s12  ;;  %p1946_p9 = scmp.lt.u32.totalorder %s1942_s12, %s2362_s9 }
  0x2a   :  { %v2110_v8 = vpack.c.bf16 %v130_v6, %v129_v5  ;;  %v132_v9 = vld [vmem:[#allocation6 + $0x18] sm:$0xff]  ;;  %v2115_v10 = vld [vmem:[%s2353_s0] sm:$0xff] }
  0x2b   :  { %v137_v11 = vrot.slane %v2115_v10, %v2108_v4  ;;  %v2120_v12 = vpack.c.bf16 %v132_v9, %v131_v7  ;;  %v2139_v13 = vld [vmem:[%s2354_s1] ss:$0 sm:$0xff]  ;;  %s2014_s1 = smov 32   ;;  %v144_v36 = vrot.slane %v2115_v10, %v2159_v35  ;;  %v151_v57 = vrot.slane %v2115_v10, %v2180_v56  ;;  %p1948_p10 = pnand %p1946_p9, %p1943_p8 }
  0x2c   :  { %1808 = vmatpush3.bf16.msra.mxu0 %v2110_v8  ;;  %1814 = vmatpush3.bf16.msra.mxu1 %v2110_v8  ;;  %v2145_v17 = vld [vmem:[%s2356_s3] ss:$0 sm:$0xff]  ;;  %s2015_s3 = smov [#allocation4]  }
  0x2d   :  { %1809 = vmatprep.subr.bf16.mxu0 %v2000_v0  ;;  %139 = vbcast.lane.b32.xlu0 %v137_v11, 256  ;;  %s123_s30 = sshll.u32 %s2015_s3, 4  ;;  %s124_s30 = int_to_ptr.vmem [resolvable:$true] %s123_s30 }
  0x2e   :  { %1815 = vmatprep.subr.bf16.mxu1 %v2000_v0 }
  0x30   :  { %1811 = vmatpush3.bf16.msra.mxu0 %v2120_v12  ;;  %1817 = vmatpush3.bf16.msra.mxu1 %v2120_v12 }
  0x31   :  { %1818 = vmatprep.subr.bf16.mxu0 %v2000_v0  ;;  %1824 = vmatprep.subr.bf16.mxu1 %v2000_v0 }
  0x33   :  { %1727 = vmatmul.mubr.f32.vlgmr.msra.gmra.mrb[0].mxu0 %v2003_v1 }
  0x34   :  { %1820 = vmatpush3.bf16.msra.mxu0 %v2110_v8  ;;  %1748 = vmatprep.mubr.msk.f32.mxu0 %vm2002_vm0, %v2003_v1 }
  0x35   :  { %1821 = vmatprep.subr.bf16.mxu0 %v2000_v0 }
  0x38   :  { %1823 = vmatpush3.bf16.msra.mxu0 %v2120_v12 }
  0x39   :  { %1830 = vmatprep.subr.bf16.mxu0 %v2000_v0 }
  0x9f   :  { %v140_v14 = vpop.permute.xlu0 %139 }
  0xa0   :  { %v196_v16 = vmul.f32 %v2139_v13, %v140_v14 }
  0xa2   :  { %v210_v18 = vadd.f32 %v2145_v17, %v196_v16 }
 0x106   :  { %v295_v21 = vpop.f32.mrb[0].mxu0 }
 0x107   :  { %v299_v22 = vadd.f32 %v295_v21, %v210_v18  ;;  %v1728_v23 = vpop.f32.mrb[1].mxu0 }
 0x108   :  { %v2201_v23 = vsub.s32 3, %v2105_v3 }
 0x109   :  { %v300_v24 = vmul.f32 %v299_v22, %v2148_v20 }
 0x10b   :  { %1888 = vtanh.f32 %v300_v24  ;;  %v158_v24 = vrot.slane %v2115_v10, %v2201_v23 }
 0x115   :  { %v1889_v25 = vpop.eup %1888 }
 0x116   :  { %v302_v27 = vmul.f32 %v1889_v25, %v2148_v20 }
 0x118   :  { %v303_v28 = vadd.f32 %v302_v27, %v2151_v26 }
 0x11a   :  { %306 = vrot.lane.b32.xlu0 %v303_v28, %s1999_s28  ;;  %v304_v31 = vmul.f32 0.0, %v303_v28 }
 0x18c   :  { %v307_v29 = vpop.permute.xlu0 %306 }
 0x18d   :  { %v309_v30 = vmul.f32 %v307_v29, %v303_v28 }
 0x18f   :  { %311 = vrot.lane.b32.xlu1 %v309_v30, %s2014_s1 }
 0x201   :  { %v312_v32 = vpop.permute.xlu1 %311 }
 0x202   :  { %v314_v33 = vadd.f32 %v312_v32, %v304_v31 }
 0x204   :  { %1890 = vtanh.f32 %v314_v33 }
 0x20e   :  { %v1891_v34 = vpop.eup %1890 }
 0x20f   :  { %317 = vrot.lane.b32.xlu1 %v1891_v34, %s1999_s28 }
 0x213   :  { %146 = vbcast.lane.b32.xlu1 %v144_v36, 256 }
 0x281   :  { %v318_v37 = vpop.permute.xlu1 %317 }
 0x282   :  { %v320_v38 = vmul.f32 %v318_v37, %v303_v28 }
 0x284   :  { %322 = vrot.lane.b32.xlu0 %v320_v38, %s2014_s1 }
 0x285   :  { %v147_v40 = vpop.permute.xlu1 %146 }
 0x286   :  { %v197_v41 = vmul.f32 %v2139_v13, %v147_v40 }
 0x288   :  { %v211_v42 = vadd.f32 %v2145_v17, %v197_v41 }
 0x2f6   :  { %v323_v39 = vpop.permute.xlu0 %322 }
 0x2f7   :  { %1738 = vmatmul.mubr.msk.f32.vlgmr.msra.gmra.mrb[0].mxu1 %vm225_vm4, %v323_v39 }
 0x2f8   :  { %1826 = vmatpush3.bf16.msra.mxu1 %v2110_v8  ;;  %1759 = vmatprep.mubr.msk.f32.mxu1 %vm2002_vm0, %v2003_v1 }
 0x2f9   :  { %1827 = vmatprep.subr.bf16.mxu1 %v2000_v0 }
 0x2fc   :  { %1829 = vmatpush3.bf16.msra.mxu1 %v2120_v12 }
 0x2fd   :  { %1836 = vmatprep.subr.bf16.mxu1 %v2000_v0 }
 0x3ca   :  { %v392_v43 = vpop.f32.mrb[0].mxu1 }
 0x3cb   :  { %v396_v44 = vadd.f32 %v392_v43, %v211_v42  ;;  %v1739_v45 = vpop.f32.mrb[1].mxu1 }
 0x3cd   :  { %v397_v46 = vmul.f32 %v396_v44, %v2148_v20 }
 0x3cf   :  { %1892 = vtanh.f32 %v397_v46  ;;  %v164_v46 = vsub.s32 4, %v2105_v3 }
 0x3d9   :  { %v1893_v47 = vpop.eup %1892 }
 0x3da   :  { %v399_v48 = vmul.f32 %v1893_v47, %v2148_v20  ;;  %v165_v47 = vrot.slane %v2115_v10, %v164_v46 }
 0x3dc   :  { %v400_v49 = vadd.f32 %v399_v48, %v2151_v26 }
 0x3de   :  { %403 = vrot.lane.b32.xlu0 %v400_v49, %s1999_s28  ;;  %v401_v52 = vmul.f32 %v400_v49, %v314_v33 }
 0x450   :  { %v404_v50 = vpop.permute.xlu0 %403 }
 0x451   :  { %v406_v51 = vmul.f32 %v404_v50, %v400_v49 }
 0x453   :  { %408 = vrot.lane.b32.xlu1 %v406_v51, %s2014_s1 }
 0x4c5   :  { %v409_v53 = vpop.permute.xlu1 %408 }
 0x4c6   :  { %v411_v54 = vadd.f32 %v409_v53, %v401_v52 }
 0x4c8   :  { %1894 = vtanh.f32 %v411_v54 }
 0x4d2   :  { %v1895_v55 = vpop.eup %1894 }
 0x4d3   :  { %414 = vrot.lane.b32.xlu0 %v1895_v55, %s1999_s28 }
 0x4d7   :  { %153 = vbcast.lane.b32.xlu0 %v151_v57, 256 }
 0x545   :  { %v415_v58 = vpop.permute.xlu0 %414 }
 0x546   :  { %v417_v59 = vmul.f32 %v415_v58, %v400_v49 }
 0x548   :  { %419 = vrot.lane.b32.xlu1 %v417_v59, %s2014_s1 }
 0x549   :  { %v154_v61 = vpop.permute.xlu0 %153 }
 0x54a   :  { %v198_v62 = vmul.f32 %v2139_v13, %v154_v61 }
 0x54c   :  { %v212_v63 = vadd.f32 %v2145_v17, %v198_v62 }
 0x5ba   :  { %v420_v60 = vpop.permute.xlu1 %419 }
 0x5bb   :  { %1749 = vmatmul.mubr.msk.f32.vlgmr.msra.gmra.mrb[2].mxu0 %vm225_vm4, %v420_v60 }
 0x5bc   :  { %1832 = vmatpush3.bf16.msra.mxu0 %v2110_v8  ;;  %1770 = vmatprep.mubr.msk.f32.mxu0 %vm2002_vm0, %v2003_v1 }
 0x5bd   :  { %1833 = vmatprep.subr.bf16.mxu0 %v2000_v0 }
 0x5c0   :  { %1835 = vmatpush3.bf16.msra.mxu0 %v2120_v12 }
 0x5c1   :  { %1842 = vmatprep.subr.bf16.mxu0 %v2000_v0 }
 0x68e   :  { %v489_v2 = vpop.f32.mrb[2].mxu0 }
 0x68f   :  { %v493_v5 = vadd.f32 %v489_v2, %v212_v63  ;;  %v1750_v6 = vpop.f32.mrb[3].mxu0 }
 0x691   :  { %v494_v7 = vmul.f32 %v493_v5, %v2148_v20 }
 0x693   :  { %1896 = vtanh.f32 %v494_v7 }
 0x69d   :  { %v1897_v9 = vpop.eup %1896 }
 0x69e   :  { %v496_v11 = vmul.f32 %v1897_v9, %v2148_v20  ;;  %v171_v9 = vsub.s32 5, %v2105_v3 }
 0x6a0   :  { %v497_v14 = vadd.f32 %v496_v11, %v2151_v26  ;;  %v172_v11 = vrot.slane %v2115_v10, %v171_v9 }
 0x6a2   :  { %500 = vrot.lane.b32.xlu1 %v497_v14, %s1999_s28  ;;  %v498_v18 = vmul.f32 %v497_v14, %v411_v54 }
 0x714   :  { %v501_v15 = vpop.permute.xlu1 %500 }
 0x715   :  { %v503_v16 = vmul.f32 %v501_v15, %v497_v14 }
 0x717   :  { %505 = vrot.lane.b32.xlu0 %v503_v16, %s2014_s1 }
 0x789   :  { %v506_v19 = vpop.permute.xlu0 %505 }
 0x78a   :  { %v508_v21 = vadd.f32 %v506_v19, %v498_v18 }
 0x78c   :  { %1898 = vtanh.f32 %v508_v21 }
 0x796   :  { %v1899_v22 = vpop.eup %1898 }
 0x797   :  { %511 = vrot.lane.b32.xlu1 %v1899_v22, %s1999_s28 }
 0x79b   :  { %160 = vbcast.lane.b32.xlu1 %v158_v24, 256 }
 0x809   :  { %v512_v25 = vpop.permute.xlu1 %511 }
 0x80a   :  { %v514_v27 = vmul.f32 %v512_v25, %v497_v14 }
 0x80c   :  { %516 = vrot.lane.b32.xlu0 %v514_v27, %s2014_s1 }
 0x80d   :  { %v161_v29 = vpop.permute.xlu1 %160 }
 0x80e   :  { %v199_v30 = vmul.f32 %v2139_v13, %v161_v29 }
 0x810   :  { %v213_v31 = vadd.f32 %v2145_v17, %v199_v30 }
 0x87e   :  { %v517_v28 = vpop.permute.xlu0 %516 }
 0x87f   :  { %1760 = vmatmul.mubr.msk.f32.vlgmr.msra.gmra.mrb[2].mxu1 %vm225_vm4, %v517_v28 }
 0x880   :  { %1838 = vmatpush3.bf16.msra.mxu1 %v2110_v8  ;;  %1781 = vmatprep.mubr.msk.f32.mxu1 %vm2002_vm0, %v2003_v1 }
 0x881   :  { %1839 = vmatprep.subr.bf16.mxu1 %v2000_v0 }
 0x884   :  { %1841 = vmatpush3.bf16.msra.mxu1 %v2120_v12 }
 0x885   :  { %1848 = vmatprep.subr.bf16.mxu1 %v2000_v0 }
 0x952   :  { %v586_v32 = vpop.f32.mrb[2].mxu1 }
 0x953   :  { %v590_v33 = vadd.f32 %v586_v32, %v213_v31  ;;  %v1761_v34 = vpop.f32.mrb[3].mxu1 }
 0x955   :  { %v591_v36 = vmul.f32 %v590_v33, %v2148_v20  ;;  %v178_v33 = vsub.s32 6, %v2105_v3 }
 0x957   :  { %1900 = vtanh.f32 %v591_v36  ;;  %v179_v34 = vrot.slane %v2115_v10, %v178_v33 }
 0x961   :  { %v1901_v37 = vpop.eup %1900 }
 0x962   :  { %v593_v38 = vmul.f32 %v1901_v37, %v2148_v20 }
 0x964   :  { %v594_v39 = vadd.f32 %v593_v38, %v2151_v26 }
 0x966   :  { %597 = vrot.lane.b32.xlu0 %v594_v39, %s1999_s28  ;;  %v595_v42 = vmul.f32 %v594_v39, %v508_v21 }
 0x9d8   :  { %v598_v40 = vpop.permute.xlu0 %597 }
 0x9d9   :  { %v600_v41 = vmul.f32 %v598_v40, %v594_v39 }
 0x9db   :  { %602 = vrot.lane.b32.xlu1 %v600_v41, %s2014_s1 }
 0xa4d   :  { %v603_v43 = vpop.permute.xlu1 %602 }
 0xa4e   :  { %v605_v44 = vadd.f32 %v603_v43, %v595_v42 }
 0xa50   :  { %1902 = vtanh.f32 %v605_v44 }
 0xa5a   :  { %v1903_v45 = vpop.eup %1902 }
 0xa5b   :  { %608 = vrot.lane.b32.xlu0 %v1903_v45, %s1999_s28 }
 0xa5f   :  { %167 = vbcast.lane.b32.xlu0 %v165_v47, 256 }
 0xacd   :  { %v609_v48 = vpop.permute.xlu0 %608 }
 0xace   :  { %v611_v49 = vmul.f32 %v609_v48, %v594_v39 }
 0xad0   :  { %613 = vrot.lane.b32.xlu1 %v611_v49, %s2014_s1 }
 0xad1   :  { %v168_v51 = vpop.permute.xlu0 %167 }
 0xad2   :  { %v200_v52 = vmul.f32 %v2139_v13, %v168_v51 }
 0xad4   :  { %v214_v53 = vadd.f32 %v2145_v17, %v200_v52 }
 0xb42   :  { %v614_v50 = vpop.permute.xlu1 %613 }
 0xb43   :  { %1771 = vmatmul.mubr.msk.f32.vlgmr.msra.gmra.mrb[4].mxu0 %vm225_vm4, %v614_v50 }
 0xb44   :  { %1844 = vmatpush3.bf16.msra.mxu0 %v2110_v8  ;;  %1792 = vmatprep.mubr.msk.f32.mxu0 %vm2002_vm0, %v2003_v1 }
 0xb45   :  { %1845 = vmatprep.subr.bf16.mxu0 %v2000_v0 }
 0xb48   :  { %1847 = vmatpush3.bf16.msra.mxu0 %v2120_v12 }
 0xc16   :  { %v683_v54 = vpop.f32.mrb[4].mxu0 }
 0xc17   :  { %v687_v55 = vadd.f32 %v683_v54, %v214_v53  ;;  %v1772_v57 = vpop.f32.mrb[5].mxu0 }
 0xc19   :  { %v688_v58 = vmul.f32 %v687_v55, %v2148_v20  ;;  %v185_v55 = vsub.s32 7, %v2105_v3 }
 0xc1b   :  { %1904 = vtanh.f32 %v688_v58  ;;  %v186_v57 = vrot.slane %v2115_v10, %v185_v55 }
 0xc25   :  { %v1905_v59 = vpop.eup %1904 }
 0xc26   :  { %v690_v60 = vmul.f32 %v1905_v59, %v2148_v20 }
 0xc28   :  { %v691_v61 = vadd.f32 %v690_v60, %v2151_v26 }
 0xc2a   :  { %694 = vrot.lane.b32.xlu1 %v691_v61, %s1999_s28  ;;  %v692_v2 = vmul.f32 %v691_v61, %v605_v44 }
 0xc9c   :  { %v695_v62 = vpop.permute.xlu1 %694 }
 0xc9d   :  { %v697_v63 = vmul.f32 %v695_v62, %v691_v61 }
 0xc9f   :  { %699 = vrot.lane.b32.xlu0 %v697_v63, %s2014_s1 }
 0xd11   :  { %v700_v5 = vpop.permute.xlu0 %699 }
 0xd12   :  { %v702_v6 = vadd.f32 %v700_v5, %v692_v2 }
 0xd14   :  { %1906 = vtanh.f32 %v702_v6 }
 0xd1e   :  { %v1907_v7 = vpop.eup %1906 }
 0xd1f   :  { %705 = vrot.lane.b32.xlu1 %v1907_v7, %s1999_s28 }
 0xd23   :  { %174 = vbcast.lane.b32.xlu1 %v172_v11, 256 }
 0xd91   :  { %v706_v14 = vpop.permute.xlu1 %705 }
 0xd92   :  { %v708_v15 = vmul.f32 %v706_v14, %v691_v61 }
 0xd94   :  { %710 = vrot.lane.b32.xlu0 %v708_v15, %s2014_s1 }
 0xd95   :  { %v175_v18 = vpop.permute.xlu1 %174 }
 0xd96   :  { %v201_v19 = vmul.f32 %v2139_v13, %v175_v18 }
 0xd98   :  { %v215_v21 = vadd.f32 %v2145_v17, %v201_v19 }
 0xe06   :  { %v711_v16 = vpop.permute.xlu0 %710 }
 0xe07   :  { %1782 = vmatmul.mubr.msk.f32.vlgmr.msra.gmra.mrb[4].mxu1 %vm225_vm4, %v711_v16 }
 0xe08   :  { %1850 = vmatpush3.bf16.msra.mxu1 %v2110_v8  ;;  %1803 = vmatprep.mubr.msk.f32.mxu1 %vm2002_vm0, %v2003_v1 }
 0xe09   :  { %1851 = vmatprep.subr.bf16.mxu1 %v2000_v0 }
 0xe0c   :  { %1853 = vmatpush3.bf16.msra.mxu1 %v2120_v12 }
 0xeda   :  { %v780_v22 = vpop.f32.mrb[4].mxu1 }
 0xedb   :  { %v784_v24 = vadd.f32 %v780_v22, %v215_v21  ;;  %v1783_v25 = vpop.f32.mrb[5].mxu1 }
 0xedd   :  { %v785_v27 = vmul.f32 %v784_v24, %v2148_v20 }
 0xedf   :  { %1908 = vtanh.f32 %v785_v27 }
 0xee9   :  { %v1909_v28 = vpop.eup %1908 }
 0xeea   :  { %v787_v8 = vmul.f32 %v1909_v28, %v2148_v20 }
 0xeec   :  { %v788_v1 = vadd.f32 %v787_v8, %v2151_v26 }
 0xeee   :  { %791 = vrot.lane.b32.xlu0 %v788_v1, %s1999_s28  ;;  %v789_v29 = vmul.f32 %v788_v1, %v702_v6 }
 0xf60   :  { %v792_v0 = vpop.permute.xlu0 %791 }
 0xf61   :  { %v794_v12 = vmul.f32 %v792_v0, %v788_v1 }
 0xf63   :  { %796 = vrot.lane.b32.xlu1 %v794_v12, %s2014_s1 }
 0xfd5   :  { %v797_v30 = vpop.permute.xlu1 %796 }
 0xfd6   :  { %v799_v31 = vadd.f32 %v797_v30, %v789_v29 }
 0xfd8   :  { %1910 = vtanh.f32 %v799_v31 }
 0xfe2   :  { %v1911_v32 = vpop.eup %1910 }
 0xfe3   :  { %802 = vrot.lane.b32.xlu0 %v1911_v32, %s1999_s28 }
 0xfe7   :  { %181 = vbcast.lane.b32.xlu0 %v179_v34, 256 }
0x1055   :  { %v803_v36 = vpop.permute.xlu0 %802 }
0x1056   :  { %v805_v37 = vmul.f32 %v803_v36, %v788_v1 }
0x1058   :  { %807 = vrot.lane.b32.xlu1 %v805_v37, %s2014_s1 }
0x1059   :  { %v182_v39 = vpop.permute.xlu0 %181 }
0x105a   :  { %v202_v40 = vmul.f32 %v2139_v13, %v182_v39 }
0x105c   :  { %v216_v41 = vadd.f32 %v2145_v17, %v202_v40 }
0x10ca   :  { %v808_v38 = vpop.permute.xlu1 %807 }
0x10cb   :  { %1793 = vmatmul.mubr.msk.f32.vlgmr.msra.gmra.mrb[6].mxu0 %vm225_vm4, %v808_v38 }
0x119e   :  { %v877_v42 = vpop.f32.mrb[6].mxu0 }
0x119f   :  { %v881_v43 = vadd.f32 %v877_v42, %v216_v41  ;;  %v1794_v44 = vpop.f32.mrb[7].mxu0 }
0x11a1   :  { %v882_v45 = vmul.f32 %v881_v43, %v2148_v20 }
0x11a3   :  { %1912 = vtanh.f32 %v882_v45 }
0x11ad   :  { %v1913_v46 = vpop.eup %1912 }
0x11ae   :  { %v884_v47 = vmul.f32 %v1913_v46, %v2148_v20 }
0x11b0   :  { %v885_v48 = vadd.f32 %v884_v47, %v2151_v26 }
0x11b2   :  { %888 = vrot.lane.b32.xlu1 %v885_v48, %s1999_s28  ;;  %v886_v51 = vmul.f32 %v885_v48, %v799_v31 }
0x1224   :  { %v889_v49 = vpop.permute.xlu1 %888 }
0x1225   :  { %v891_v50 = vmul.f32 %v889_v49, %v885_v48 }
0x1227   :  { %893 = vrot.lane.b32.xlu0 %v891_v50, %s2014_s1 }
0x1299   :  { %v894_v52 = vpop.permute.xlu0 %893 }
0x129a   :  { %v896_v53 = vadd.f32 %v894_v52, %v886_v51 }
0x129c   :  { %1914 = vtanh.f32 %v896_v53 }
0x12a6   :  { %v1915_v54 = vpop.eup %1914 }
0x12a7   :  { %899 = vrot.lane.b32.xlu1 %v1915_v54, %s1999_s28 }
0x12ab   :  { %188 = vbcast.lane.b32.xlu1 %v186_v57, 256 }
0x1319   :  { %v900_v58 = vpop.permute.xlu1 %899 }
0x131a   :  { %v902_v59 = vmul.f32 %v900_v58, %v885_v48 }
0x131c   :  { %904 = vrot.lane.b32.xlu0 %v902_v59, %s2014_s1 }
0x131d   :  { %v189_v61 = vpop.permute.xlu1 %188 }
0x131e   :  { %v203_v62 = vmul.f32 %v2139_v13, %v189_v61 }
0x1320   :  { %v217_v63 = vadd.f32 %v2145_v17, %v203_v62 }
0x138e   :  { %v905_v60 = vpop.permute.xlu0 %904 }
0x138f   :  { %1804 = vmatmul.mubr.msk.f32.vlgmr.msra.gmra.mrb[6].mxu1 %vm225_vm4, %v905_v60 }
0x1462   :  { %v974_v2 = vpop.f32.mrb[6].mxu1 }
0x1463   :  { %v978_v5 = vadd.f32 %v974_v2, %v217_v63  ;;  %v1805_v6 = vpop.f32.mrb[7].mxu1 }
0x1465   :  { %v979_v3 = vmul.f32 %v978_v5, %v2148_v20 }
0x1467   :  { %1916 = vtanh.f32 %v979_v3 }
0x1471   :  { %v1917_v10 = vpop.eup %1916 }
0x1472   :  { %v981_v7 = vmul.f32 %v1917_v10, %v2148_v20 }
0x1474   :  { %v982_v9 = vadd.f32 %v981_v7, %v2151_v26 }
0x1476   :  { %985 = vrot.lane.b32.xlu0 %v982_v9, %s1999_s28  ;;  %v983_v13 = vmul.f32 %v982_v9, %v896_v53 }
0x14e8   :  { %v986_v11 = vpop.permute.xlu0 %985 }
0x14e9   :  { %v988_v14 = vmul.f32 %v986_v11, %v982_v9 }
0x14eb   :  { %990 = vrot.lane.b32.xlu1 %v988_v14, %s2014_s1 }
0x155d   :  { %v991_v17 = vpop.permute.xlu1 %990 }
0x155e   :  { %v993_v15 = vadd.f32 %v991_v17, %v983_v13 }
0x155f   :  { %1951 = shalt.err (!%p1948_p10)  }
0x1560   :  { %s1952_s17 = scalar_lea.vmem %s124_s30, 4096  ;;  %p1957_p12 = scmp.lt.s32.totalorder %s124_s30, %s124_s30 }
0x1561   :  { %p1953_p11 = scmp.ne.s32.totalorder %s124_s30, %s1952_s17  ;;  %p1958_p13 = scmp.lt.s32.totalorder %s1952_s17, %s1952_s17 }
0x1563   :  { %p1959_p0 = por %p1958_p13, %p1957_p12 }
0x1565   :  { %p1960_p1 = pnand %p1959_p0, %p1953_p11 }
0x1567   :  { %1963 = shalt.err (!%p1960_p1)  }
0x1568   :  { %126 = dma.hbm_to_vmem [thread:$0]  %s2362_s9, 4096, %s124_s30, [#allocation5 + $0x2]  ;;  %1918 = vtanh.f32 %v993_v15 }
0x1572   :  { %v1919_v20 = vpop.eup %1918 }
0x1573   :  { %996 = vrot.lane.b32.xlu0 %v1919_v20, %s1999_s28 }
0x15e5   :  { %v997_v26 = vpop.permute.xlu0 %996 }
0x15e6   :  { %v999_v16 = vmul.f32 %v997_v26, %v982_v9 }
0x15e8   :  { %v1004_v18 = vpack.c.bf16 %v999_v16, %v999_v16 }
0x15e9   :  { %1988 = dma.done.wait [#allocation5], 1024 }
0x15ea   :  { %1989 = vsyncadd [#allocation5], 4294966272  ;;  %v2016_v19 = vmov 0   ;;  %1036 = vrot.lane.b32.xlu0 %v1004_v18, %s2014_s1  ;;  %v1006_v21 = vld [vmem:[#allocation2 + $0x8] sm:$0xff]  ;;  %v1008_v22 = vld [vmem:[#allocation2 + $0x18] sm:$0xff] }
0x15eb   :  { %1073 = vmatprep.mubr.bf16.mxu0 %v2016_v19  ;;  %1114 = vmatprep.mubr.bf16.mxu1 %v2016_v19  ;;  %v1005_v24 = vld [vmem:[#allocation2] sm:$0xff]  ;;  %v1007_v25 = vld [vmem:[#allocation2 + $0x10] sm:$0xff]  ;;  %v1010_v27 = vld [vmem:[#allocation2 + $0x28] sm:$0xff] }
0x15ec   :  { %1041 = vmatprep.subr.bf16.mxu0 %v1006_v21  ;;  %1082 = vmatprep.subr.bf16.mxu1 %v1008_v22  ;;  %v1012_v28 = vld [vmem:[#allocation2 + $0x38] sm:$0xff]  ;;  %v1009_v8 = vld [vmem:[#allocation2 + $0x20] sm:$0xff]  ;;  %v1011_v1 = vld [vmem:[#allocation2 + $0x30] sm:$0xff] }
0x15ed   :  { %1042 = vmatpush1.bf16.msra.mxu0 %v1005_v24  ;;  %1083 = vmatpush1.bf16.msra.mxu1 %v1007_v25  ;;  %v1013_v12 = vld [vmem:[%s2357_s4] sm:$0xf] }
0x15ee   :  { %1043 = vmatprep.subr.bf16.mxu0 %v1010_v27  ;;  %1084 = vmatprep.subr.bf16.mxu1 %v1012_v28  ;;  %v1018_v29 = vrot.slane %v1013_v12, %v2108_v4  ;;  %v1026_v30 = vrot.slane %v1013_v12, %v2180_v56  ;;  %v1022_v31 = vrot.slane %v1013_v12, %v2159_v35 }
0x15ef   :  { %v1030_v32 = vrot.slane %v1013_v12, %v2201_v23 }
0x15f1   :  { %1044 = vmatpush1.bf16.msra.mxu0 %v1009_v8  ;;  %1085 = vmatpush1.bf16.msra.mxu1 %v1011_v1 }
0x165c   :  { %v1037_v0 = vpop.permute.xlu0 %1036 }
0x165d   :  { %1628 = vmatmul.mubr.msk.bf16.vlgmr.msra.gmra.mrb[8].mxu0 %vm225_vm4, %v1037_v0  ;;  %1629 = vmatmul.mubr.msk.bf16.vlgmr.msra.gmra.mrb[8].mxu1 %vm225_vm4, %v1037_v0 }
0x1730   :  { %v1075_v33 = vpop.f32.mrb[8].mxu0  ;;  %v1116_v34 = vpop.f32.mrb[8].mxu1 }
0x1731   :  { %v2301_v36 = vadd.f32 %v1075_v33, %v1018_v29  ;;  %v2303_v37 = vadd.f32 %v1116_v34, %v1026_v30  ;;  %v1077_v38 = vpop.f32.mrb[9].mxu0  ;;  %v1118_v39 = vpop.f32.mrb[9].mxu1 }
0x1732   :  { %v1078_v40 = vadd.f32 %v1077_v38, %v1022_v31  ;;  %v2305_v41 = vadd.f32 %v1118_v39, %v1030_v32  ;;  %v1079_v42 = vpop.f32.mrb[10].mxu0  ;;  %v1120_v43 = vpop.f32.mrb[10].mxu1 }
0x1733   :  { %v1123_v44 = vmax.f32 %v2301_v36, 0.0  ;;  %v1125_v45 = vmax.f32 %v2303_v37, 0.0  ;;  %v1080_v46 = vpop.f32.mrb[11].mxu0  ;;  %v1121_v47 = vpop.f32.mrb[11].mxu1 }
0x1734   :  { %v1124_v48 = vmax.f32 %v1078_v40, 0.0  ;;  %v1126_v49 = vmax.f32 %v2305_v41, 0.0 }
0x1735   :  { %1990 = dma.done.wait [#allocation5 + $0x1], 16384 }
0x1736   :  { %1991 = vsyncadd [#allocation5 + $0x1], 4294950912  ;;  %v1132_v50 = vpack.c.bf16 %v1124_v48, %v1124_v48  ;;  %v1136_v51 = vld [vmem:[#allocation3 + $0x8] sm:$0xff]  ;;  %v1138_v52 = vld [vmem:[#allocation3 + $0x18] sm:$0xff] }
0x1737   :  { %v1135_v53 = vld [vmem:[#allocation3] sm:$0xff]  ;;  %1285 = vmatprep.subr.bf16.mxu0 %v1136_v51  ;;  %1367 = vmatprep.subr.bf16.mxu1 %v1138_v52  ;;  %v1137_v54 = vld [vmem:[#allocation3 + $0x10] sm:$0xff]  ;;  %v1140_v55 = vld [vmem:[#allocation3 + $0x28] sm:$0xff] }
0x1738   :  { %1317 = vmatprep.mubr.bf16.mxu0 %v1132_v50  ;;  %1399 = vmatprep.mubr.bf16.mxu1 %v1132_v50  ;;  %v1142_v57 = vld [vmem:[#allocation3 + $0x38] sm:$0xff]  ;;  %v1139_v58 = vld [vmem:[#allocation3 + $0x20] sm:$0xff]  ;;  %v1141_v59 = vld [vmem:[#allocation3 + $0x30] sm:$0xff] }
0x1739   :  { %1286 = vmatpush1.bf16.msra.mxu0 %v1135_v53  ;;  %1368 = vmatpush1.bf16.msra.mxu1 %v1137_v54  ;;  %v1144_v60 = vld [vmem:[#allocation3 + $0x48] sm:$0xff]  ;;  %v1146_v61 = vld [vmem:[#allocation3 + $0x58] sm:$0xff]  ;;  %v1143_v62 = vld [vmem:[#allocation3 + $0x40] sm:$0xff] }
0x173a   :  { %1287 = vmatprep.subr.bf16.mxu0 %v1140_v55  ;;  %1369 = vmatprep.subr.bf16.mxu1 %v1142_v57  ;;  %v1145_v63 = vld [vmem:[#allocation3 + $0x50] sm:$0xff]  ;;  %v1148_v2 = vld [vmem:[#allocation3 + $0x68] sm:$0xff]  ;;  %v1150_v5 = vld [vmem:[#allocation3 + $0x78] sm:$0xff] }
0x173b   :  { %v1147_v6 = vld [vmem:[#allocation3 + $0x60] sm:$0xff]  ;;  %v1149_v3 = vld [vmem:[#allocation3 + $0x70] sm:$0xff]  ;;  %v1152_v10 = vld [vmem:[#allocation3 + $0x88] sm:$0xff] }
0x173c   :  { %v1154_v7 = vld [vmem:[#allocation3 + $0x98] sm:$0xff]  ;;  %v1151_v9 = vld [vmem:[#allocation3 + $0x80] sm:$0xff]  ;;  %v1153_v11 = vld [vmem:[#allocation3 + $0x90] sm:$0xff] }
0x173d   :  { %1288 = vmatpush1.bf16.msra.mxu0 %v1139_v58  ;;  %1370 = vmatpush1.bf16.msra.mxu1 %v1141_v59  ;;  %v1156_v14 = vld [vmem:[#allocation3 + $0xa8] sm:$0xff]  ;;  %v1158_v13 = vld [vmem:[#allocation3 + $0xb8] sm:$0xff]  ;;  %v1155_v17 = vld [vmem:[#allocation3 + $0xa0] sm:$0xff] }
0x173e   :  { %1289 = vmatprep.subr.bf16.mxu0 %v1144_v60  ;;  %1371 = vmatprep.subr.bf16.mxu1 %v1146_v61  ;;  %v1157_v15 = vld [vmem:[#allocation3 + $0xb0] sm:$0xff]  ;;  %v1160_v20 = vld [vmem:[#allocation3 + $0xc8] sm:$0xff]  ;;  %v1162_v26 = vld [vmem:[#allocation3 + $0xd8] sm:$0xff] }
0x173f   :  { %v1159_v16 = vld [vmem:[#allocation3 + $0xc0] sm:$0xff]  ;;  %v1161_v18 = vld [vmem:[#allocation3 + $0xd0] sm:$0xff]  ;;  %v1164_v19 = vld [vmem:[#allocation3 + $0xe8] sm:$0xff] }
0x1740   :  { %v1166_v21 = vld [vmem:[#allocation3 + $0xf8] sm:$0xff]  ;;  %v1163_v22 = vld [vmem:[#allocation3 + $0xe0] sm:$0xff]  ;;  %v1165_v24 = vld [vmem:[#allocation3 + $0xf0] sm:$0xff] }
0x1741   :  { %1290 = vmatpush1.bf16.msra.mxu0 %v1143_v62  ;;  %1372 = vmatpush1.bf16.msra.mxu1 %v1145_v63  ;;  %v1168_v25 = vld [vmem:[#allocation3 + $0x108] sm:$0xff]  ;;  %v1170_v27 = vld [vmem:[#allocation3 + $0x118] sm:$0xff]  ;;  %v1167_v28 = vld [vmem:[#allocation3 + $0x100] sm:$0xff] }
0x1742   :  { %1291 = vmatprep.subr.bf16.mxu0 %v1148_v2  ;;  %1373 = vmatprep.subr.bf16.mxu1 %v1150_v5  ;;  %v1169_v8 = vld [vmem:[#allocation3 + $0x110] sm:$0xff]  ;;  %v1172_v1 = vld [vmem:[#allocation3 + $0x128] sm:$0xff]  ;;  %v1174_v0 = vld [vmem:[#allocation3 + $0x138] sm:$0xff]  ;;  %v1131_v2 = vpack.c.bf16 %v1123_v44, %v1123_v44 }
0x1743   :  { %v1171_v12 = vld [vmem:[#allocation3 + $0x120] sm:$0xff]  ;;  %v1173_v29 = vld [vmem:[#allocation3 + $0x130] sm:$0xff]  ;;  %v1176_v30 = vld [vmem:[#allocation3 + $0x148] sm:$0xff] }
0x1744   :  { %v1178_v31 = vld [vmem:[#allocation3 + $0x158] sm:$0xff]  ;;  %v1175_v32 = vld [vmem:[#allocation3 + $0x140] sm:$0xff]  ;;  %v1177_v33 = vld [vmem:[#allocation3 + $0x150] sm:$0xff] }
0x1745   :  { %1292 = vmatpush1.bf16.msra.mxu0 %v1147_v6  ;;  %1374 = vmatpush1.bf16.msra.mxu1 %v1149_v3  ;;  %v1180_v34 = vld [vmem:[#allocation3 + $0x168] sm:$0xff]  ;;  %v1182_v38 = vld [vmem:[#allocation3 + $0x178] sm:$0xff]  ;;  %v1179_v39 = vld [vmem:[#allocation3 + $0x160] sm:$0xff] }
0x1746   :  { %1293 = vmatprep.subr.bf16.mxu0 %v1152_v10  ;;  %1375 = vmatprep.subr.bf16.mxu1 %v1154_v7  ;;  %v1181_v40 = vld [vmem:[#allocation3 + $0x170] sm:$0xff]  ;;  %v1184_v42 = vld [vmem:[#allocation3 + $0x188] sm:$0xff]  ;;  %v1186_v43 = vld [vmem:[#allocation3 + $0x198] sm:$0xff]  ;;  %v1134_v7 = vpack.c.bf16 %v1126_v49, %v1126_v49 }
0x1747   :  { %v1183_v46 = vld [vmem:[#allocation3 + $0x180] sm:$0xff]  ;;  %v1185_v47 = vld [vmem:[#allocation3 + $0x190] sm:$0xff]  ;;  %v1188_v48 = vld [vmem:[#allocation3 + $0x1a8] sm:$0xff] }
0x1748   :  { %v1190_v50 = vld [vmem:[#allocation3 + $0x1b8] sm:$0xff]  ;;  %v1187_v51 = vld [vmem:[#allocation3 + $0x1a0] sm:$0xff]  ;;  %v1189_v52 = vld [vmem:[#allocation3 + $0x1b0] sm:$0xff] }
0x1749   :  { %1294 = vmatpush1.bf16.msra.mxu0 %v1151_v9  ;;  %1376 = vmatpush1.bf16.msra.mxu1 %v1153_v11  ;;  %v1192_v53 = vld [vmem:[#allocation3 + $0x1c8] sm:$0xff]  ;;  %v1194_v54 = vld [vmem:[#allocation3 + $0x1d8] sm:$0xff]  ;;  %v1191_v55 = vld [vmem:[#allocation3 + $0x1c0] sm:$0xff] }
0x174a   :  { %1295 = vmatprep.subr.bf16.mxu0 %v1156_v14  ;;  %1377 = vmatprep.subr.bf16.mxu1 %v1158_v13  ;;  %v1193_v57 = vld [vmem:[#allocation3 + $0x1d0] sm:$0xff]  ;;  %v1196_v58 = vld [vmem:[#allocation3 + $0x1e8] sm:$0xff]  ;;  %v1198_v59 = vld [vmem:[#allocation3 + $0x1f8] sm:$0xff] }
0x174b   :  { %v1195_v60 = vld [vmem:[#allocation3 + $0x1e0] sm:$0xff]  ;;  %v1197_v61 = vld [vmem:[#allocation3 + $0x1f0] sm:$0xff]  ;;  %v1200_v62 = vld [vmem:[#allocation3 + $0x208] sm:$0xff] }
0x174c   :  { %v1202_v63 = vld [vmem:[#allocation3 + $0x218] sm:$0xff]  ;;  %v1199_v5 = vld [vmem:[#allocation3 + $0x200] sm:$0xff]  ;;  %v1201_v6 = vld [vmem:[#allocation3 + $0x210] sm:$0xff] }
0x174d   :  { %1296 = vmatpush1.bf16.msra.mxu0 %v1155_v17  ;;  %1378 = vmatpush1.bf16.msra.mxu1 %v1157_v15  ;;  %v1204_v3 = vld [vmem:[#allocation3 + $0x228] sm:$0xff]  ;;  %v1206_v10 = vld [vmem:[#allocation3 + $0x238] sm:$0xff]  ;;  %v1203_v36 = vld [vmem:[#allocation3 + $0x220] sm:$0xff] }
0x174e   :  { %1297 = vmatprep.subr.bf16.mxu0 %v1160_v20  ;;  %1379 = vmatprep.subr.bf16.mxu1 %v1162_v26  ;;  %v1205_v44 = vld [vmem:[#allocation3 + $0x230] sm:$0xff]  ;;  %v1208_v9 = vld [vmem:[#allocation3 + $0x248] sm:$0xff]  ;;  %v1210_v11 = vld [vmem:[#allocation3 + $0x258] sm:$0xff] }
0x174f   :  { %v1207_v14 = vld [vmem:[#allocation3 + $0x240] sm:$0xff]  ;;  %v1209_v41 = vld [vmem:[#allocation3 + $0x250] sm:$0xff]  ;;  %v1212_v13 = vld [vmem:[#allocation3 + $0x268] sm:$0xff] }
0x1750   :  { %v1214_v49 = vld [vmem:[#allocation3 + $0x278] sm:$0xff]  ;;  %v1211_v17 = vld [vmem:[#allocation3 + $0x260] sm:$0xff]  ;;  %v1213_v15 = vld [vmem:[#allocation3 + $0x270] sm:$0xff] }
0x1751   :  { %1298 = vmatpush1.bf16.msra.mxu0 %v1159_v16  ;;  %1380 = vmatpush1.bf16.msra.mxu1 %v1161_v18  ;;  %v1216_v20 = vld [vmem:[#allocation3 + $0x288] sm:$0xff]  ;;  %v1218_v26 = vld [vmem:[#allocation3 + $0x298] sm:$0xff]  ;;  %v1215_v16 = vld [vmem:[#allocation3 + $0x280] sm:$0xff] }
0x1752   :  { %1299 = vmatprep.subr.bf16.mxu0 %v1164_v19  ;;  %1381 = vmatprep.subr.bf16.mxu1 %v1166_v21  ;;  %v1217_v18 = vld [vmem:[#allocation3 + $0x290] sm:$0xff]  ;;  %v1220_v19 = vld [vmem:[#allocation3 + $0x2a8] sm:$0xff]  ;;  %v1222_v21 = vld [vmem:[#allocation3 + $0x2b8] sm:$0xff] }
0x1755   :  { %1300 = vmatpush1.bf16.msra.mxu0 %v1163_v22  ;;  %1382 = vmatpush1.bf16.msra.mxu1 %v1165_v24  ;;  %v1219_v22 = vld [vmem:[#allocation3 + $0x2a0] sm:$0xff]  ;;  %v1221_v24 = vld [vmem:[#allocation3 + $0x2b0] sm:$0xff] }
0x1756   :  { %1301 = vmatprep.subr.bf16.mxu0 %v1168_v25  ;;  %1383 = vmatprep.subr.bf16.mxu1 %v1170_v27  ;;  %v1224_v25 = vld [vmem:[#allocation3 + $0x2c8] sm:$0xff]  ;;  %v1226_v27 = vld [vmem:[#allocation3 + $0x2d8] sm:$0xff] }
0x1759   :  { %1302 = vmatpush1.bf16.msra.mxu0 %v1167_v28  ;;  %1384 = vmatpush1.bf16.msra.mxu1 %v1169_v8  ;;  %v1223_v28 = vld [vmem:[#allocation3 + $0x2c0] sm:$0xff]  ;;  %v1225_v8 = vld [vmem:[#allocation3 + $0x2d0] sm:$0xff] }
0x175a   :  { %1303 = vmatprep.subr.bf16.mxu0 %v1172_v1  ;;  %1385 = vmatprep.subr.bf16.mxu1 %v1174_v0  ;;  %v1228_v1 = vld [vmem:[#allocation3 + $0x2e8] sm:$0xff]  ;;  %v1230_v0 = vld [vmem:[#allocation3 + $0x2f8] sm:$0xff] }
0x175d   :  { %1304 = vmatpush1.bf16.msra.mxu0 %v1171_v12  ;;  %1386 = vmatpush1.bf16.msra.mxu1 %v1173_v29  ;;  %v1227_v12 = vld [vmem:[#allocation3 + $0x2e0] sm:$0xff]  ;;  %v1229_v29 = vld [vmem:[#allocation3 + $0x2f0] sm:$0xff] }
0x175e   :  { %1305 = vmatprep.subr.bf16.mxu0 %v1176_v30  ;;  %1387 = vmatprep.subr.bf16.mxu1 %v1178_v31  ;;  %v1232_v30 = vld [vmem:[#allocation3 + $0x308] sm:$0xff]  ;;  %v1234_v31 = vld [vmem:[#allocation3 + $0x318] sm:$0xff] }
0x1761   :  { %1306 = vmatpush1.bf16.msra.mxu0 %v1175_v32  ;;  %1388 = vmatpush1.bf16.msra.mxu1 %v1177_v33  ;;  %v1231_v32 = vld [vmem:[#allocation3 + $0x300] sm:$0xff]  ;;  %v1233_v33 = vld [vmem:[#allocation3 + $0x310] sm:$0xff] }
0x1762   :  { %1307 = vmatprep.subr.bf16.mxu0 %v1180_v34  ;;  %1389 = vmatprep.subr.bf16.mxu1 %v1182_v38  ;;  %v1236_v34 = vld [vmem:[#allocation3 + $0x328] sm:$0xff]  ;;  %v1238_v38 = vld [vmem:[#allocation3 + $0x338] sm:$0xff] }
0x1765   :  { %1308 = vmatpush1.bf16.msra.mxu0 %v1179_v39  ;;  %1390 = vmatpush1.bf16.msra.mxu1 %v1181_v40  ;;  %v1235_v39 = vld [vmem:[#allocation3 + $0x320] sm:$0xff]  ;;  %v1237_v40 = vld [vmem:[#allocation3 + $0x330] sm:$0xff] }
0x1766   :  { %1309 = vmatprep.subr.bf16.mxu0 %v1184_v42  ;;  %1391 = vmatprep.subr.bf16.mxu1 %v1186_v43  ;;  %v1240_v42 = vld [vmem:[#allocation3 + $0x348] sm:$0xff]  ;;  %v1242_v43 = vld [vmem:[#allocation3 + $0x358] sm:$0xff] }
0x1769   :  { %1310 = vmatpush1.bf16.msra.mxu0 %v1183_v46  ;;  %1392 = vmatpush1.bf16.msra.mxu1 %v1185_v47  ;;  %v1239_v46 = vld [vmem:[#allocation3 + $0x340] sm:$0xff]  ;;  %v1241_v47 = vld [vmem:[#allocation3 + $0x350] sm:$0xff] }
0x176a   :  { %1311 = vmatprep.subr.bf16.mxu0 %v1188_v48  ;;  %1393 = vmatprep.subr.bf16.mxu1 %v1190_v50  ;;  %v1244_v48 = vld [vmem:[#allocation3 + $0x368] sm:$0xff]  ;;  %v1246_v50 = vld [vmem:[#allocation3 + $0x378] sm:$0xff] }
0x176d   :  { %1312 = vmatpush1.bf16.msra.mxu0 %v1187_v51  ;;  %1394 = vmatpush1.bf16.msra.mxu1 %v1189_v52  ;;  %v1243_v51 = vld [vmem:[#allocation3 + $0x360] sm:$0xff]  ;;  %v1245_v52 = vld [vmem:[#allocation3 + $0x370] sm:$0xff] }
0x176e   :  { %1313 = vmatprep.subr.bf16.mxu0 %v1192_v53  ;;  %1395 = vmatprep.subr.bf16.mxu1 %v1194_v54  ;;  %v1248_v53 = vld [vmem:[#allocation3 + $0x388] sm:$0xff]  ;;  %v1250_v54 = vld [vmem:[#allocation3 + $0x398] sm:$0xff] }
0x1771   :  { %1314 = vmatpush1.bf16.msra.mxu0 %v1191_v55  ;;  %1396 = vmatpush1.bf16.msra.mxu1 %v1193_v57  ;;  %v1247_v55 = vld [vmem:[#allocation3 + $0x380] sm:$0xff]  ;;  %v1249_v57 = vld [vmem:[#allocation3 + $0x390] sm:$0xff] }
0x1772   :  { %1315 = vmatprep.subr.bf16.mxu0 %v1196_v58  ;;  %1397 = vmatprep.subr.bf16.mxu1 %v1198_v59  ;;  %v1252_v58 = vld [vmem:[#allocation3 + $0x3a8] sm:$0xff]  ;;  %v1254_v59 = vld [vmem:[#allocation3 + $0x3b8] sm:$0xff] }
0x1775   :  { %1316 = vmatpush1.bf16.msra.mxu0 %v1195_v60  ;;  %1398 = vmatpush1.bf16.msra.mxu1 %v1197_v61  ;;  %v1251_v60 = vld [vmem:[#allocation3 + $0x3a0] sm:$0xff]  ;;  %v1253_v61 = vld [vmem:[#allocation3 + $0x3b0] sm:$0xff] }
0x1776   :  { %1326 = vmatprep.subr.bf16.mxu0 %v1200_v62  ;;  %1408 = vmatprep.subr.bf16.mxu1 %v1202_v63  ;;  %v1256_v62 = vld [vmem:[#allocation3 + $0x3c8] sm:$0xff]  ;;  %v1258_v63 = vld [vmem:[#allocation3 + $0x3d8] sm:$0xff] }
0x1778   :  { %1318 = vmatmul.mubr.bf16.vlgmr.msra.gmra.mrb[12].mxu0 %v1131_v2  ;;  %1400 = vmatmul.mubr.bf16.vlgmr.msra.gmra.mrb[12].mxu1 %v1131_v2  ;;  %v1255_v2 = vld [vmem:[#allocation3 + $0x3c0] sm:$0xff] }
0x1779   :  { %1327 = vmatpush1.bf16.msra.mxu0 %v1199_v5  ;;  %1409 = vmatpush1.bf16.msra.mxu1 %v1201_v6  ;;  %v1257_v5 = vld [vmem:[#allocation3 + $0x3d0] sm:$0xff]  ;;  %v1260_v6 = vld [vmem:[#allocation3 + $0x3e8] sm:$0xff] }
0x177a   :  { %1328 = vmatprep.subr.bf16.mxu0 %v1204_v3  ;;  %1410 = vmatprep.subr.bf16.mxu1 %v1206_v10  ;;  %v1262_v3 = vld [vmem:[#allocation3 + $0x3f8] sm:$0xff]  ;;  %v1259_v10 = vld [vmem:[#allocation3 + $0x3e0] sm:$0xff] }
0x177b   :  { %1358 = vmatprep.mubr.bf16.mxu0 %v1134_v7  ;;  %1440 = vmatprep.mubr.bf16.mxu1 %v1134_v7  ;;  %v1261_v7 = vld [vmem:[#allocation3 + $0x3f0] sm:$0xff] }
0x177d   :  { %1329 = vmatpush1.bf16.msra.mxu0 %v1203_v36  ;;  %1411 = vmatpush1.bf16.msra.mxu1 %v1205_v44  ;;  %v1133_v36 = vpack.c.bf16 %v1125_v45, %v1125_v45  ;;  %v1263_v44 = vld [vmem:[%s2358_s5] sm:$0xf] }
0x177e   :  { %1330 = vmatprep.subr.bf16.mxu0 %v1208_v9  ;;  %1412 = vmatprep.subr.bf16.mxu1 %v1210_v11  ;;  %v1268_v9 = vrot.slane %v1263_v44, %v2108_v4  ;;  %v1276_v11 = vrot.slane %v1263_v44, %v2180_v56 }
0x1781   :  { %1331 = vmatpush1.bf16.msra.mxu0 %v1207_v14  ;;  %1413 = vmatpush1.bf16.msra.mxu1 %v1209_v41  ;;  %v1272_v14 = vrot.slane %v1263_v44, %v2159_v35  ;;  %v1280_v41 = vrot.slane %v1263_v44, %v2201_v23 }
0x1782   :  { %1332 = vmatprep.subr.bf16.mxu0 %v1212_v13  ;;  %1414 = vmatprep.subr.bf16.mxu1 %v1214_v49 }
0x1785   :  { %1333 = vmatpush1.bf16.msra.mxu0 %v1211_v17  ;;  %1415 = vmatpush1.bf16.msra.mxu1 %v1213_v15 }
0x1786   :  { %1334 = vmatprep.subr.bf16.mxu0 %v1216_v20  ;;  %1416 = vmatprep.subr.bf16.mxu1 %v1218_v26 }
0x1789   :  { %1335 = vmatpush1.bf16.msra.mxu0 %v1215_v16  ;;  %1417 = vmatpush1.bf16.msra.mxu1 %v1217_v18 }
0x178a   :  { %1336 = vmatprep.subr.bf16.mxu0 %v1220_v19  ;;  %1418 = vmatprep.subr.bf16.mxu1 %v1222_v21 }
0x178d   :  { %1337 = vmatpush1.bf16.msra.mxu0 %v1219_v22  ;;  %1419 = vmatpush1.bf16.msra.mxu1 %v1221_v24 }
0x178e   :  { %1338 = vmatprep.subr.bf16.mxu0 %v1224_v25  ;;  %1420 = vmatprep.subr.bf16.mxu1 %v1226_v27 }
0x1791   :  { %1339 = vmatpush1.bf16.msra.mxu0 %v1223_v28  ;;  %1421 = vmatpush1.bf16.msra.mxu1 %v1225_v8 }
0x1792   :  { %1340 = vmatprep.subr.bf16.mxu0 %v1228_v1  ;;  %1422 = vmatprep.subr.bf16.mxu1 %v1230_v0 }
0x1795   :  { %1341 = vmatpush1.bf16.msra.mxu0 %v1227_v12  ;;  %1423 = vmatpush1.bf16.msra.mxu1 %v1229_v29 }
0x1796   :  { %1342 = vmatprep.subr.bf16.mxu0 %v1232_v30  ;;  %1424 = vmatprep.subr.bf16.mxu1 %v1234_v31 }
0x1799   :  { %1343 = vmatpush1.bf16.msra.mxu0 %v1231_v32  ;;  %1425 = vmatpush1.bf16.msra.mxu1 %v1233_v33 }
0x179a   :  { %1344 = vmatprep.subr.bf16.mxu0 %v1236_v34  ;;  %1426 = vmatprep.subr.bf16.mxu1 %v1238_v38 }
0x179d   :  { %1345 = vmatpush1.bf16.msra.mxu0 %v1235_v39  ;;  %1427 = vmatpush1.bf16.msra.mxu1 %v1237_v40 }
0x179e   :  { %1346 = vmatprep.subr.bf16.mxu0 %v1240_v42  ;;  %1428 = vmatprep.subr.bf16.mxu1 %v1242_v43 }
0x17a1   :  { %1347 = vmatpush1.bf16.msra.mxu0 %v1239_v46  ;;  %1429 = vmatpush1.bf16.msra.mxu1 %v1241_v47 }
0x17a2   :  { %1348 = vmatprep.subr.bf16.mxu0 %v1244_v48  ;;  %1430 = vmatprep.subr.bf16.mxu1 %v1246_v50 }
0x17a5   :  { %1349 = vmatpush1.bf16.msra.mxu0 %v1243_v51  ;;  %1431 = vmatpush1.bf16.msra.mxu1 %v1245_v52 }
0x17a6   :  { %1350 = vmatprep.subr.bf16.mxu0 %v1248_v53  ;;  %1432 = vmatprep.subr.bf16.mxu1 %v1250_v54 }
0x17a9   :  { %1351 = vmatpush1.bf16.msra.mxu0 %v1247_v55  ;;  %1433 = vmatpush1.bf16.msra.mxu1 %v1249_v57 }
0x17aa   :  { %1352 = vmatprep.subr.bf16.mxu0 %v1252_v58  ;;  %1434 = vmatprep.subr.bf16.mxu1 %v1254_v59 }
0x17ad   :  { %1353 = vmatpush1.bf16.msra.mxu0 %v1251_v60  ;;  %1435 = vmatpush1.bf16.msra.mxu1 %v1253_v61 }
0x17ae   :  { %1354 = vmatprep.subr.bf16.mxu0 %v1256_v62  ;;  %1436 = vmatprep.subr.bf16.mxu1 %v1258_v63 }
0x17b1   :  { %1355 = vmatpush1.bf16.msra.mxu0 %v1255_v2  ;;  %1437 = vmatpush1.bf16.msra.mxu1 %v1257_v5 }
0x17b2   :  { %1356 = vmatprep.subr.bf16.mxu0 %v1260_v6  ;;  %1438 = vmatprep.subr.bf16.mxu1 %v1262_v3 }
0x17b5   :  { %1357 = vmatpush1.bf16.msra.mxu0 %v1259_v10  ;;  %1439 = vmatpush1.bf16.msra.mxu1 %v1261_v7 }
0x17b8   :  { %1359 = vmatmul.mubr.bf16.vlgmr.msra.gmra.mrb[12].mxu0 %v1133_v36  ;;  %1441 = vmatmul.mubr.bf16.vlgmr.msra.gmra.mrb[12].mxu1 %v1133_v36 }
0x188b   :  { %v1360_v13 = vpop.f32.mrb[12].mxu0  ;;  %v1442_v37 = vpop.f32.mrb[12].mxu1 }
0x188c   :  { %v2326_v49 = vadd.f32 %v1360_v13, %v1268_v9  ;;  %v2328_v45 = vadd.f32 %v1442_v37, %v1276_v11  ;;  %v1362_v17 = vpop.f32.mrb[13].mxu0  ;;  %v1444_v15 = vpop.f32.mrb[13].mxu1 }
0x188d   :  { %v1855_v20 = vadd.f32 %v1362_v17, %v1272_v14  ;;  %v1857_v26 = vadd.f32 %v1444_v15, %v1280_v41  ;;  %v1364_v16 = vpop.f32.mrb[14].mxu0  ;;  %v1446_v18 = vpop.f32.mrb[14].mxu1 }
0x188e   :  { %v1449_v4 = vmax.f32 %v2326_v49, 0.0  ;;  %v1451_v56 = vmax.f32 %v2328_v45, 0.0  ;;  %v1365_v19 = vpop.f32.mrb[15].mxu0  ;;  %v1447_v35 = vpop.f32.mrb[15].mxu1 }
0x188f   :  { %v1450_v21 = vmax.f32 %v1855_v20, 0.0  ;;  %v1452_v23 = vmax.f32 %v1857_v26, 0.0 }
0x1890   :  { %1992 = dma.done.wait [#allocation5 + $0x2], 4096 }
0x1891   :  { %1993 = vsyncadd [#allocation5 + $0x2], 4294963200  ;;  %v1457_v22 = vpack.c.bf16 %v1450_v21, %v1450_v21  ;;  %v1459_v24 = vpack.c.bf16 %v1452_v23, %v1452_v23  ;;  %v1468_v25 = vld [vmem:[#allocation4 + $0x40] sm:$0xff]  ;;  %v1469_v1 = vld [vmem:[#allocation4 + $0x48] sm:$0xff]  ;;  %v1456_v62 = vpack.c.bf16 %v1449_v4, %v1449_v4  ;;  %v1458_v63 = vpack.c.bf16 %v1451_v56, %v1451_v56  ;;  %s2017_s22 = smov [#allocation9]  }
0x1892   :  { %v1484_v27 = vld [vmem:[#allocation4 + $0xc0] sm:$0xff]  ;;  %1674 = vmatprep.subr.bf16.mxu0 %v1468_v25  ;;  %v1485_v0 = vld [vmem:[#allocation4 + $0xc8] sm:$0xff]  ;;  %v1470_v30 = vld [vmem:[#allocation4 + $0x50] sm:$0xff]  ;;  %s1586_s24 = sshll.u32 %s2017_s22, 4  ;;  %s1587_s24 = int_to_ptr.vmem [resolvable:$true] %s1586_s24 }
0x1893   :  { %1531 = vmatprep.mubr.bf16.mxu0 %v1457_v22  ;;  %1571 = vmatprep.mubr.bf16.mxu1 %v1459_v24  ;;  %v1460_v28 = vld [vmem:[#allocation4] sm:$0xff]  ;;  %v1461_v12 = vld [vmem:[#allocation4 + $0x8] sm:$0xff]  ;;  %v1486_v31 = vld [vmem:[#allocation4 + $0xd0] sm:$0xff]  ;;  %s1964_s25 = scalar_lea.vmem %s1587_s24, 32  ;;  %p1969_p3 = scmp.lt.s32.totalorder %s1587_s24, %s1587_s24 }
0x1894   :  { %1696 = vmatprep.subr.bf16.mxu1 %v1484_v27  ;;  %v1476_v8 = vld [vmem:[#allocation4 + $0x80] sm:$0xff]  ;;  %1675 = vmatpush3.bf16.msra.mxu0 %v1460_v28  ;;  %v1477_v29 = vld [vmem:[#allocation4 + $0x88] sm:$0xff]  ;;  %v1462_v32 = vld [vmem:[#allocation4 + $0x10] sm:$0xff]  ;;  %p1965_p2 = scmp.ne.s32.totalorder %s1587_s24, %s1964_s25  ;;  %p1970_p4 = scmp.lt.s32.totalorder %s1964_s25, %s1964_s25 }
0x1895   :  { %1697 = vmatpush3.bf16.msra.mxu1 %v1476_v8  ;;  %1676 = vmatprep.subr.bf16.mxu0 %v1469_v1  ;;  %v1478_v33 = vld [vmem:[#allocation4 + $0x90] sm:$0xff]  ;;  %v1471_v34 = vld [vmem:[#allocation4 + $0x58] sm:$0xff]  ;;  %v1472_v42 = vld [vmem:[#allocation4 + $0x60] sm:$0xff] }
0x1896   :  { %1698 = vmatprep.subr.bf16.mxu1 %v1485_v0  ;;  %v1487_v38 = vld [vmem:[#allocation4 + $0xd8] sm:$0xff]  ;;  %v1488_v43 = vld [vmem:[#allocation4 + $0xe0] sm:$0xff]  ;;  %v1473_v48 = vld [vmem:[#allocation4 + $0x68] sm:$0xff]  ;;  %p1971_p5 = por %p1970_p4, %p1969_p3 }
0x1897   :  { %v1463_v39 = vld [vmem:[#allocation4 + $0x18] sm:$0xff]  ;;  %v1464_v46 = vld [vmem:[#allocation4 + $0x20] sm:$0xff]  ;;  %v1489_v50 = vld [vmem:[#allocation4 + $0xe8] sm:$0xff] }
0x1898   :  { %1677 = vmatpush3.bf16.msra.mxu0 %v1461_v12  ;;  %v1479_v40 = vld [vmem:[#allocation4 + $0x98] sm:$0xff]  ;;  %v1480_v47 = vld [vmem:[#allocation4 + $0xa0] sm:$0xff]  ;;  %v1465_v51 = vld [vmem:[#allocation4 + $0x28] sm:$0xff]  ;;  %p1972_p6 = pnand %p1971_p5, %p1965_p2 }
0x1899   :  { %1699 = vmatpush3.bf16.msra.mxu1 %v1477_v29  ;;  %1678 = vmatprep.subr.bf16.mxu0 %v1470_v30  ;;  %v1481_v52 = vld [vmem:[#allocation4 + $0xa8] sm:$0xff]  ;;  %v1474_v53 = vld [vmem:[#allocation4 + $0x70] sm:$0xff]  ;;  %v1475_v58 = vld [vmem:[#allocation4 + $0x78] sm:$0xff] }
0x189a   :  { %1700 = vmatprep.subr.bf16.mxu1 %v1486_v31  ;;  %v1490_v54 = vld [vmem:[#allocation4 + $0xf0] sm:$0xff]  ;;  %v1491_v59 = vld [vmem:[#allocation4 + $0xf8] sm:$0xff]  ;;  %v1630_v6 = vld [vmem:[%s2359_s6] ss:$0 sm:$0xff] }
0x189b   :  { %v1466_v55 = vld [vmem:[#allocation4 + $0x30] sm:$0xff]  ;;  %v1467_v60 = vld [vmem:[#allocation4 + $0x38] sm:$0xff] }
0x189c   :  { %1679 = vmatpush3.bf16.msra.mxu0 %v1462_v32  ;;  %v1482_v57 = vld [vmem:[#allocation4 + $0xb0] sm:$0xff]  ;;  %v1483_v61 = vld [vmem:[#allocation4 + $0xb8] sm:$0xff] }
0x189d   :  { %1701 = vmatpush3.bf16.msra.mxu1 %v1478_v33  ;;  %1680 = vmatprep.subr.bf16.mxu0 %v1471_v34 }
0x189e   :  { %1702 = vmatprep.subr.bf16.mxu1 %v1487_v38 }
0x18a0   :  { %1681 = vmatpush3.bf16.msra.mxu0 %v1463_v39 }
0x18a1   :  { %1703 = vmatpush3.bf16.msra.mxu1 %v1479_v40  ;;  %1682 = vmatprep.subr.bf16.mxu0 %v1472_v42 }
0x18a2   :  { %1704 = vmatprep.subr.bf16.mxu1 %v1488_v43 }
0x18a4   :  { %1683 = vmatpush3.bf16.msra.mxu0 %v1464_v46 }
0x18a5   :  { %1705 = vmatpush3.bf16.msra.mxu1 %v1480_v47  ;;  %1684 = vmatprep.subr.bf16.mxu0 %v1473_v48 }
0x18a6   :  { %1706 = vmatprep.subr.bf16.mxu1 %v1489_v50 }
0x18a8   :  { %1685 = vmatpush3.bf16.msra.mxu0 %v1465_v51 }
0x18a9   :  { %1707 = vmatpush3.bf16.msra.mxu1 %v1481_v52  ;;  %1686 = vmatprep.subr.bf16.mxu0 %v1474_v53 }
0x18aa   :  { %1708 = vmatprep.subr.bf16.mxu1 %v1490_v54 }
0x18ac   :  { %1687 = vmatpush3.bf16.msra.mxu0 %v1466_v55 }
0x18ad   :  { %1709 = vmatpush3.bf16.msra.mxu1 %v1482_v57  ;;  %1688 = vmatprep.subr.bf16.mxu0 %v1475_v58 }
0x18ae   :  { %1710 = vmatprep.subr.bf16.mxu1 %v1491_v59 }
0x18b0   :  { %1689 = vmatpush3.bf16.msra.mxu0 %v1467_v60 }
0x18b1   :  { %1711 = vmatpush3.bf16.msra.mxu1 %v1483_v61 }
0x18b3   :  { %1532 = vmatmul.mubr.bf16.vlgmr.msra.gmra.mrb[16].mxu0 %v1456_v62 }
0x18b4   :  { %1572 = vmatmul.mubr.bf16.vlgmr.msra.gmra.mrb[16].mxu1 %v1458_v63 }
0x1986   :  { %v1690_v2 = vpop.f32.mrb[16].mxu0 }
0x1987   :  { %v1712_v5 = vpop.f32.mrb[16].mxu1  ;;  %v1691_v3 = vpop.f32.mrb[17].mxu0 }
0x1988   :  { %v1713_v10 = vpop.f32.mrb[17].mxu1  ;;  %v1692_v7 = vadd.f32 %v1691_v3, %v1690_v2  ;;  %v1693_v44 = vpop.f32.mrb[18].mxu0 }
0x1989   :  { %v1714_v36 = vadd.f32 %v1713_v10, %v1712_v5  ;;  %v1715_v9 = vpop.f32.mrb[18].mxu1  ;;  %v1694_v11 = vpop.f32.mrb[19].mxu0 }
0x198a   :  { %v1716_v14 = vpop.f32.mrb[19].mxu1  ;;  %v1534_v41 = vadd.f32 %v1692_v7, %v1630_v6 }
0x198c   :  { %v1574_v13 = vadd.f32 %v1714_v36, %v1534_v41 }
0x198e   :  { %1579 = vst [vmem:[#allocation9] sm:$0x3] %v1574_v13 }
0x198f   :  { %1975 = shalt.err (!%p1972_p6)
}
0x1990   :  { %s1976_s23 = scalar_lea.hbm %s2363_s10, 32 }
0x1991   :  { %p1977_p7 = scmp.ne.s32.totalorder %s2363_s10, %s1976_s23  ;;  %p1980_p8 = scmp.lt.u32.totalorder %s1976_s23, %s2363_s10 }
0x1993   :  { %p1982_p9 = pnand %p1980_p8, %p1977_p7 }
0x1995   :  { %1985 = shalt.err (!%p1982_p9)
}
0x1996   :  { %1589 = dma.vmem_to_hbm [thread:$0]  %s1587_s24, 32, %s2363_s10, [#allocation8]  }
0x1997   :  { %1994 = dma.done.wait [#allocation8], 32  }
0x1998   :  { %1995 = vsyncadd [#allocation8], 4294967264 }
0x1999   :  { %1593 = vsyncpa [#allocation7], 1 }
0x199a   :  { %1594 = vsyncpa [#allocation8], 1 }
0x199b   :  { %1595 = vsyncmov [#allocation5] }
0x199e   :  { %s1596_s3 = vpop.sfrf %1595 }
0x199f   :  { %p1631_p10 = scmp.ne.s32.totalorder %s1596_s3, 0 }
0x19a1   :  { %1600 = shalt.err (%p1631_p10)  }
0x19a2   :  { %1602 = vsyncmov [#allocation5 + $0x1] }
0x19a5   :  { %s1603_s30 = vpop.sfrf %1602 }
0x19a6   :  { %p1632_p11 = scmp.ne.s32.totalorder %s1603_s30, 0 }
0x19a8   :  { %1607 = shalt.err (%p1632_p11)  }
0x19a9   :  { %1609 = vsyncmov [#allocation5 + $0x2] }
0x19ac   :  { %s1610_s2 = vpop.sfrf %1609 }
0x19ad   :  { %p1633_p12 = scmp.ne.s32.totalorder %s1610_s2, 0 }
0x19af   :  { %1614 = shalt.err (%p1633_p12)  }

</bundles_post_ra>
